<compile_context>
chip_gen: v7x
topology: tpu7x:2x2x1
jax: 0.10.0
libtpu: 0.0.40
codegen_flags: <defaults>
</compile_context>

<pallas_src>
import functools
import math

import jax
import jax.numpy as jnp
from jax.experimental import pallas as pl
from jax.experimental.pallas import tpu as pltpu


# ------------------------- fused encoder + classifier kernel -------------------------

def _fused_encoder_kernel(
    x_ref, mask_ref, emb_g_ref, emb_b_ref,
    wqkv_ref, bqkv_ref, wo_ref, wi_ref, wo2_ref, bi_ref, vecs_ref,
    cls_wd_ref, cls_bd_ref, cls_wp_ref, cls_bp_ref,
    logits_ref,
    *, num_layers, num_heads, head_dim, scale, eps):
    bblk, seq, hid = x_ref.shape
    m = bblk * seq

    def layernorm(v, g, b):
        mu = jnp.mean(v, axis=-1, keepdims=True)
        c = v - mu
        var = jnp.mean(c * c, axis=-1, keepdims=True)
        return c * jax.lax.rsqrt(var + eps) * g + b

    # Embedding LayerNorm, then process the whole batch block as one (Bblk*S, H) slab so
    # the GEMMs use more MXU rows.
    x = layernorm(x_ref[...].reshape(m, hid), emb_g_ref[...], emb_b_ref[...])
    mask = mask_ref[...]                            # (Bblk, 1, S) additive key mask

    # Layer stack fully inside the kernel (no per-layer grid steps / weight re-DMA).
    # Statically unrolled since L is tiny; for large L use lax.fori_loop + w_ref[l].
    for l in range(num_layers):
        # ---- self-attention: per-(proj, head) lane-0-aligned weights ----
        attn = jnp.zeros((m, hid), jnp.float32)
        for h in range(num_heads):
            q = (jnp.dot(x, wqkv_ref[l, 0, h], preferred_element_type=jnp.float32)
                 + bqkv_ref[l, 0, h])               # (M, dh)
            k = (jnp.dot(x, wqkv_ref[l, 1, h], preferred_element_type=jnp.float32)
                 + bqkv_ref[l, 1, h])
            v = (jnp.dot(x, wqkv_ref[l, 2, h], preferred_element_type=jnp.float32)
                 + bqkv_ref[l, 2, h])
            qb = q.reshape(bblk, seq, head_dim)
            kb = k.reshape(bblk, seq, head_dim)
            vb = v.reshape(bblk, seq, head_dim)
            s = jnp.einsum("bqd,bkd->bqk", qb, kb,
                           preferred_element_type=jnp.float32) * scale + mask
            s = s - jnp.max(s, axis=-1, keepdims=True)
            p = jnp.exp(s)
            p = p * pl.reciprocal(jnp.sum(p, axis=-1, keepdims=True), approx=True)
            ctx = jnp.einsum("bqk,bkd->bqd", p, vb,
                             preferred_element_type=jnp.float32).reshape(m, head_dim)
            # merge-heads folded into the output projection:
            #   concat_h(ctx_h) @ Wo == sum_h ctx_h @ Wo[h]
            attn = attn + jnp.dot(ctx, wo_ref[l, h],
                                  preferred_element_type=jnp.float32)
        attn = attn + vecs_ref[l, 0]                                   # attn out bias
        x = layernorm(attn + x, vecs_ref[l, 1], vecs_ref[l, 2])        # LN1

        # ---- feed-forward (exact erf GELU, PyTorch parity) ----
        ffn = jnp.dot(x, wi_ref[l], preferred_element_type=jnp.float32) + bi_ref[l]
        ffn = 0.5 * ffn * (1.0 + jax.lax.erf(ffn * 0.7071067811865476))
        ffn_out = (jnp.dot(ffn, wo2_ref[l], preferred_element_type=jnp.float32)
                   + vecs_ref[l, 3])                                   # FFN out bias
        x = layernorm(ffn_out + x, vecs_ref[l, 4], vecs_ref[l, 5])     # LN2

    # ---- classification head on the <s> token of every sequence in the block ----
    cls_tok = x.reshape(bblk, seq, hid)[:, 0, :]                       # (Bblk, H)
    hidden = jnp.tanh(
        jnp.dot(cls_tok, cls_wd_ref[...], preferred_element_type=jnp.float32)
        + cls_bd_ref[...])
    logits = (jnp.dot(hidden, cls_wp_ref[...], preferred_element_type=jnp.float32)
              + cls_bp_ref[...])                                       # (Bblk, 128) lane-dense
    logits_ref[...] = logits.reshape(bblk, 1, -1)


# ------------------------- model wrapper (glue) -------------------------

CFG = dict(
    vocab_size=50,
    hidden=32,
    num_heads=2,
    intermediate=64,
    num_layers=2,
    num_labels=3,
    max_pos=16,
    pad_token_id=1,
    layer_norm_eps=1e-5,
)

_LANE = 128  # lane-dense logits slab width


def init_params(key, cfg):
    H, I, V, P, L, NL = (cfg["hidden"], cfg["intermediate"], cfg["vocab_size"],
                         cfg["max_pos"], cfg["num_layers"], cfg["num_labels"])
    nh = cfg["num_heads"]
    dh = H // nh
    keys = iter(jax.random.split(key, 16))

    def w(shape):
        return (0.02 * jax.random.normal(next(keys), shape)).astype(jnp.float32)

    def zeros(shape):
        return jnp.zeros(shape, jnp.float32)

    def ones(shape):
        return jnp.ones(shape, jnp.float32)

    # per-layer H-wide vectors packed as (L, 6, 1, H):
    #   [0]=attn out bias  [1]=LN1 gamma  [2]=LN1 beta
    #   [3]=FFN out bias   [4]=LN2 gamma  [5]=LN2 beta
    vecs = jnp.stack(
        [zeros((L, 1, H)), ones((L, 1, H)), zeros((L, 1, H)),
         zeros((L, 1, H)), ones((L, 1, H)), zeros((L, 1, H))], axis=1)

    return {
        "word_emb": w((V, H)),
        "pos_emb": w((P, H)),
        "type_emb": w((1, H)),
        "emb_ln_g": ones((1, H)), "emb_ln_b": zeros((1, H)),
        # per-(proj, head) layout so every per-head MXU operand starts at lane 0.
        "Wqkv": w((L, 3, nh, H, dh)),
        "bqkv": zeros((L, 3, nh, 1, dh)),
        "Wo": w((L, nh, dh, H)),
        "Wi": w((L, H, I)), "bi": zeros((L, 1, I)),
        "Wo2": w((L, I, H)),
        "vecs": vecs,
        "cls_Wd": w((H, H)), "cls_bd": zeros((1, H)),
        "cls_Wp": w((H, NL)), "cls_bp": zeros((1, NL)),
    }


def _resident_spec(arr):
    """Full-array block with a constant index map: one DMA per launch, VMEM-resident."""
    nd = arr.ndim
    return pl.BlockSpec(arr.shape, lambda b, nd=nd: (0,) * nd)


def ascc_roberta_forward(params, input_ids, attention_mask, cfg=CFG):
    B, S = input_ids.shape
    H = cfg["hidden"]
    nh = cfg["num_heads"]
    dh = H // nh
    L = cfg["num_layers"]
    NL = cfg["num_labels"]
    eps = cfg["layer_norm_eps"]
    pad = cfg["pad_token_id"]

    # Pack several sequences per grid step so the GEMMs see up to ~128 MXU rows.
    bblk = max(1, min(B, max(1, _LANE // S)))
    while B % bblk:
        bblk -= 1

    # --- RoBERTa embedding gathers (plain-JAX glue; LN is fused into the kernel) ---
    # TODO(synk): the embedding-table gathers + position-id cumsum are data-dependent
    # gathers with no clean BlockSpec expression; they stay in plain JAX.
    not_pad = (input_ids != pad).astype(jnp.int32)
    position_ids = jnp.cumsum(not_pad, axis=1) * not_pad + pad        # roberta positions
    x = (params["word_emb"][input_ids]
         + params["pos_emb"][position_ids]
         + params["type_emb"][0][None, None, :]).astype(jnp.float32)  # (B, S, H)

    # additive key mask
    add_mask = ((1.0 - attention_mask.astype(jnp.float32)) * -1e9)[:, None, :]  # (B,1,S)

    # lane-dense classifier out-proj: zero-pad to 128 output lanes, slice back after.
    cls_wp = jnp.zeros((H, _LANE), jnp.float32).at[:, :NL].set(params["cls_Wp"])
    cls_bp = jnp.zeros((1, _LANE), jnp.float32).at[:, :NL].set(params["cls_bp"])

    fused = pl.pallas_call(
        functools.partial(_fused_encoder_kernel,
                          num_layers=L, num_heads=nh, head_dim=dh,
                          scale=1.0 / math.sqrt(dh), eps=eps),
        out_shape=jax.ShapeDtypeStruct((B, 1, _LANE), jnp.float32),
        grid=(B // bblk,),
        in_specs=[
            pl.BlockSpec((bblk, S, H), lambda b: (b, 0, 0)),   # embeddings (per block)
            pl.BlockSpec((bblk, 1, S), lambda b: (b, 0, 0)),   # additive key mask
            _resident_spec(params["emb_ln_g"]),
            _resident_spec(params["emb_ln_b"]),
            _resident_spec(params["Wqkv"]),
            _resident_spec(params["bqkv"]),
            _resident_spec(params["Wo"]),
            _resident_spec(params["Wi"]),
            _resident_spec(params["Wo2"]),
            _resident_spec(params["bi"]),
            _resident_spec(params["vecs"]),
            _resident_spec(params["cls_Wd"]),
            _resident_spec(params["cls_bd"]),
            _resident_spec(cls_wp),
            _resident_spec(cls_bp),
        ],
        out_specs=pl.BlockSpec((bblk, 1, _LANE), lambda b: (b, 0, 0)),
        compiler_params=pltpu.CompilerParams(
            dimension_semantics=("parallel",)),   # batch blocks shard across TCs on v7x
    )

    logits_slab = fused(
        x, add_mask,
        params["emb_ln_g"], params["emb_ln_b"],
        params["Wqkv"], params["bqkv"],
        params["Wo"], params["Wi"], params["Wo2"], params["bi"], params["vecs"],
        params["cls_Wd"], params["cls_bd"], cls_wp, cls_bp,
    )

    logits = logits_slab[:, 0, :NL]

    # PyTorch module returns (clean_logits, clean_logits); the adversarial branch
    # after the first return is dead code.
    return logits, logits


if __name__ == "__main__":
    key = jax.random.PRNGKey(0)
    pkey, dkey = jax.random.split(key)

    params = init_params(pkey, CFG)

    B, S = 2, 8
    input_ids = jax.random.randint(dkey, (B, S), 3, CFG["vocab_size"], dtype=jnp.int32)
    # pad the tail of the second example, matching the attention mask
    input_ids = input_ids.at[1, 6:].set(CFG["pad_token_id"])
    attention_mask = jnp.ones((B, S), jnp.int32).at[1, 6:].set(0)

    fwd = jax.jit(functools.partial(ascc_roberta_forward, cfg=CFG))
    clean_logits, adv_logits = jax.block_until_ready(fwd(params, input_ids, attention_mask))

    assert clean_logits.shape == (B, CFG["num_labels"])
    assert jnp.all(clean_logits == adv_logits)
    assert bool(jnp.all(jnp.isfinite(clean_logits)))
    print("KERNEL_OK")
</pallas_src>

<mosaic_0001>
module attributes {stable_mosaic.version = 11 : i64} {
  func.func @_fused_encoder_kernel(%arg0: i32, %arg1: memref<2x8x32xf32, #tpu.memory_space<vmem>>, %arg2: memref<2x1x8xf32, #tpu.memory_space<vmem>>, %arg3: memref<1x32xf32, #tpu.memory_space<vmem>>, %arg4: memref<1x32xf32, #tpu.memory_space<vmem>>, %arg5: memref<2x3x2x32x16xf32, #tpu.memory_space<vmem>>, %arg6: memref<2x3x2x1x16xf32, #tpu.memory_space<vmem>>, %arg7: memref<2x2x16x32xf32, #tpu.memory_space<vmem>>, %arg8: memref<2x32x64xf32, #tpu.memory_space<vmem>>, %arg9: memref<2x64x32xf32, #tpu.memory_space<vmem>>, %arg10: memref<2x1x64xf32, #tpu.memory_space<vmem>>, %arg11: memref<2x6x1x32xf32, #tpu.memory_space<vmem>>, %arg12: memref<32x32xf32, #tpu.memory_space<vmem>>, %arg13: memref<1x32xf32, #tpu.memory_space<vmem>>, %arg14: memref<32x128xf32, #tpu.memory_space<vmem>>, %arg15: memref<1x128xf32, #tpu.memory_space<vmem>>, %arg16: memref<2x1x128xf32, #tpu.memory_space<vmem>>) attributes {dimension_semantics = [#tpu.dimension_semantics<parallel>], iteration_bounds = array<i64: 1>, scalar_prefetch = 0 : i64, scratch_operands = 0 : i64, tpu.core_type = #tpu.core_type<tc>, window_params = [{transform_indices = @transform_0, window_bounds = array<i64: 2, 8, 32>}, {transform_indices = @transform_1, window_bounds = array<i64: 2, 1, 8>}, {pipeline_mode = #tpu.pipeline_mode<synchronous>, transform_indices = @transform_2, window_bounds = array<i64: 1, 32>}, {pipeline_mode = #tpu.pipeline_mode<synchronous>, transform_indices = @transform_3, window_bounds = array<i64: 1, 32>}, {pipeline_mode = #tpu.pipeline_mode<synchronous>, transform_indices = @transform_4, window_bounds = array<i64: 2, 3, 2, 32, 16>}, {pipeline_mode = #tpu.pipeline_mode<synchronous>, transform_indices = @transform_5, window_bounds = array<i64: 2, 3, 2, 1, 16>}, {pipeline_mode = #tpu.pipeline_mode<synchronous>, transform_indices = @transform_6, window_bounds = array<i64: 2, 2, 16, 32>}, {pipeline_mode = #tpu.pipeline_mode<synchronous>, transform_indices = @transform_7, window_bounds = array<i64: 2, 32, 64>}, {pipeline_mode = #tpu.pipeline_mode<synchronous>, transform_indices = @transform_8, window_bounds = array<i64: 2, 64, 32>}, {pipeline_mode = #tpu.pipeline_mode<synchronous>, transform_indices = @transform_9, window_bounds = array<i64: 2, 1, 64>}, {pipeline_mode = #tpu.pipeline_mode<synchronous>, transform_indices = @transform_10, window_bounds = array<i64: 2, 6, 1, 32>}, {pipeline_mode = #tpu.pipeline_mode<synchronous>, transform_indices = @transform_11, window_bounds = array<i64: 32, 32>}, {pipeline_mode = #tpu.pipeline_mode<synchronous>, transform_indices = @transform_12, window_bounds = array<i64: 1, 32>}, {pipeline_mode = #tpu.pipeline_mode<synchronous>, transform_indices = @transform_13, window_bounds = array<i64: 32, 128>}, {pipeline_mode = #tpu.pipeline_mode<synchronous>, transform_indices = @transform_14, window_bounds = array<i64: 1, 128>}, {transform_indices = @transform_15, window_bounds = array<i64: 2, 1, 128>}]} {
    %c0 = arith.constant 0 : index
    %c0_0 = arith.constant 0 : index
    %c0_1 = arith.constant 0 : index
    %0 = vector.load %arg1[%c0, %c0_0, %c0_1] : memref<2x8x32xf32, #tpu.memory_space<vmem>>, vector<2x8x32xf32>
    %1 = vector.shape_cast %0 : vector<2x8x32xf32> to vector<16x32xf32>
    %c0_2 = arith.constant 0 : index
    %c0_3 = arith.constant 0 : index
    %2 = vector.load %arg3[%c0_2, %c0_3] : memref<1x32xf32, #tpu.memory_space<vmem>>, vector<1x32xf32>
    %c0_4 = arith.constant 0 : index
    %c0_5 = arith.constant 0 : index
    %3 = vector.load %arg4[%c0_4, %c0_5] : memref<1x32xf32, #tpu.memory_space<vmem>>, vector<1x32xf32>
    %cst = arith.constant dense<0.000000e+00> : vector<16xf32>
    %4 = vector.multi_reduction <add>, %1, %cst [1] : vector<16x32xf32> to vector<16xf32>
    %5 = vector.shape_cast %4 : vector<16xf32> to vector<16x1xf32>
    %cst_6 = arith.constant 3.200000e+01 : f32
    %6 = vector.broadcast %cst_6 : f32 to vector<16x1xf32>
    %7 = arith.divf %5, %6 : vector<16x1xf32>
    %8 = vector.broadcast %7 : vector<16x1xf32> to vector<16x32xf32>
    %9 = arith.subf %1, %8 : vector<16x32xf32>
    %10 = arith.mulf %9, %9 : vector<16x32xf32>
    %cst_7 = arith.constant dense<0.000000e+00> : vector<16xf32>
    %11 = vector.multi_reduction <add>, %10, %cst_7 [1] : vector<16x32xf32> to vector<16xf32>
    %12 = vector.shape_cast %11 : vector<16xf32> to vector<16x1xf32>
    %cst_8 = arith.constant 3.200000e+01 : f32
    %13 = vector.broadcast %cst_8 : f32 to vector<16x1xf32>
    %14 = arith.divf %12, %13 : vector<16x1xf32>
    %cst_9 = arith.constant 9.99999974E-6 : f32
    %15 = vector.broadcast %cst_9 : f32 to vector<16x1xf32>
    %16 = arith.addf %14, %15 : vector<16x1xf32>
    %17 = math.rsqrt %16 : vector<16x1xf32>
    %18 = vector.broadcast %17 : vector<16x1xf32> to vector<16x32xf32>
    %19 = arith.mulf %9, %18 : vector<16x32xf32>
    %20 = vector.broadcast %2 : vector<1x32xf32> to vector<16x32xf32>
    %21 = arith.mulf %19, %20 : vector<16x32xf32>
    %22 = vector.broadcast %3 : vector<1x32xf32> to vector<16x32xf32>
    %23 = arith.addf %21, %22 : vector<16x32xf32>
    %c0_10 = arith.constant 0 : index
    %c0_11 = arith.constant 0 : index
    %c0_12 = arith.constant 0 : index
    %24 = vector.load %arg2[%c0_10, %c0_11, %c0_12] : memref<2x1x8xf32, #tpu.memory_space<vmem>>, vector<2x1x8xf32>
    %cst_13 = arith.constant 0.000000e+00 : f32
    %25 = vector.broadcast %cst_13 : f32 to vector<16x32xf32>
    %c0_14 = arith.constant 0 : index
    %c0_15 = arith.constant 0 : index
    %c0_16 = arith.constant 0 : index
    %c0_17 = arith.constant 0 : index
    %c0_18 = arith.constant 0 : index
    %26 = vector.load %arg5[%c0_14, %c0_15, %c0_16, %c0_17, %c0_18] : memref<2x3x2x32x16xf32, #tpu.memory_space<vmem>>, vector<1x1x1x32x16xf32>
    %27 = vector.shape_cast %26 : vector<1x1x1x32x16xf32> to vector<32x16xf32>
    %cst_19 = arith.constant dense<0.000000e+00> : vector<16x16xf32>
    %28 = tpu.matmul %23, %27, %cst_19 {dimension_numbers = #tpu.dot_dimension_numbers<[1], [0], [0], [1], [0, 0, 1, 1], [], []>} : vector<16x32xf32>, vector<32x16xf32>, vector<16x16xf32> -> vector<16x16xf32>
    %c0_20 = arith.constant 0 : index
    %c0_21 = arith.constant 0 : index
    %c0_22 = arith.constant 0 : index
    %c0_23 = arith.constant 0 : index
    %c0_24 = arith.constant 0 : index
    %29 = vector.load %arg6[%c0_20, %c0_21, %c0_22, %c0_23, %c0_24] : memref<2x3x2x1x16xf32, #tpu.memory_space<vmem>>, vector<1x1x1x1x16xf32>
    %30 = vector.shape_cast %29 : vector<1x1x1x1x16xf32> to vector<1x16xf32>
    %31 = vector.broadcast %30 : vector<1x16xf32> to vector<16x16xf32>
    %32 = arith.addf %28, %31 : vector<16x16xf32>
    %c0_25 = arith.constant 0 : index
    %c1 = arith.constant 1 : index
    %c0_26 = arith.constant 0 : index
    %c0_27 = arith.constant 0 : index
    %c0_28 = arith.constant 0 : index
    %33 = vector.load %arg5[%c0_25, %c1, %c0_26, %c0_27, %c0_28] : memref<2x3x2x32x16xf32, #tpu.memory_space<vmem>>, vector<1x1x1x32x16xf32>
    %34 = vector.shape_cast %33 : vector<1x1x1x32x16xf32> to vector<32x16xf32>
    %cst_29 = arith.constant dense<0.000000e+00> : vector<16x16xf32>
    %35 = tpu.matmul %23, %34, %cst_29 {dimension_numbers = #tpu.dot_dimension_numbers<[1], [0], [0], [1], [0, 0, 1, 1], [], []>} : vector<16x32xf32>, vector<32x16xf32>, vector<16x16xf32> -> vector<16x16xf32>
    %c0_30 = arith.constant 0 : index
    %c1_31 = arith.constant 1 : index
    %c0_32 = arith.constant 0 : index
    %c0_33 = arith.constant 0 : index
    %c0_34 = arith.constant 0 : index
    %36 = vector.load %arg6[%c0_30, %c1_31, %c0_32, %c0_33, %c0_34] : memref<2x3x2x1x16xf32, #tpu.memory_space<vmem>>, vector<1x1x1x1x16xf32>
    %37 = vector.shape_cast %36 : vector<1x1x1x1x16xf32> to vector<1x16xf32>
    %38 = vector.broadcast %37 : vector<1x16xf32> to vector<16x16xf32>
    %39 = arith.addf %35, %38 : vector<16x16xf32>
    %c0_35 = arith.constant 0 : index
    %c2 = arith.constant 2 : index
    %c0_36 = arith.constant 0 : index
    %c0_37 = arith.constant 0 : index
    %c0_38 = arith.constant 0 : index
    %40 = vector.load %arg5[%c0_35, %c2, %c0_36, %c0_37, %c0_38] : memref<2x3x2x32x16xf32, #tpu.memory_space<vmem>>, vector<1x1x1x32x16xf32>
    %41 = vector.shape_cast %40 : vector<1x1x1x32x16xf32> to vector<32x16xf32>
    %cst_39 = arith.constant dense<0.000000e+00> : vector<16x16xf32>
    %42 = tpu.matmul %23, %41, %cst_39 {dimension_numbers = #tpu.dot_dimension_numbers<[1], [0], [0], [1], [0, 0, 1, 1], [], []>} : vector<16x32xf32>, vector<32x16xf32>, vector<16x16xf32> -> vector<16x16xf32>
    %c0_40 = arith.constant 0 : index
    %c2_41 = arith.constant 2 : index
    %c0_42 = arith.constant 0 : index
    %c0_43 = arith.constant 0 : index
    %c0_44 = arith.constant 0 : index
    %43 = vector.load %arg6[%c0_40, %c2_41, %c0_42, %c0_43, %c0_44] : memref<2x3x2x1x16xf32, #tpu.memory_space<vmem>>, vector<1x1x1x1x16xf32>
    %44 = vector.shape_cast %43 : vector<1x1x1x1x16xf32> to vector<1x16xf32>
    %45 = vector.broadcast %44 : vector<1x16xf32> to vector<16x16xf32>
    %46 = arith.addf %42, %45 : vector<16x16xf32>
    %47 = vector.shape_cast %32 : vector<16x16xf32> to vector<2x8x16xf32>
    %48 = vector.shape_cast %39 : vector<16x16xf32> to vector<2x8x16xf32>
    %49 = vector.shape_cast %46 : vector<16x16xf32> to vector<2x8x16xf32>
    "tpu.trace_start"() <{level = 10 : i32, message = "bqd,bkd->bqk"}> : () -> ()
    %cst_45 = arith.constant dense<0.000000e+00> : vector<2x8x8xf32>
    %50 = tpu.matmul %47, %48, %cst_45 {dimension_numbers = #tpu.dot_dimension_numbers<[2], [2], [1], [1], [0, 0, 0, 1, 1, 1], [0], [0]>} : vector<2x8x16xf32>, vector<2x8x16xf32>, vector<2x8x8xf32> -> vector<2x8x8xf32>
    "tpu.trace_stop"() : () -> ()
    %cst_46 = arith.constant 2.500000e-01 : f32
    %51 = vector.broadcast %cst_46 : f32 to vector<2x8x8xf32>
    %52 = arith.mulf %50, %51 : vector<2x8x8xf32>
    %53 = vector.broadcast %24 : vector<2x1x8xf32> to vector<2x8x8xf32>
    %54 = arith.addf %52, %53 : vector<2x8x8xf32>
    %cst_47 = arith.constant dense<0xFF800000> : vector<2x8xf32>
    %55 = vector.multi_reduction <maximumf>, %54, %cst_47 [2] : vector<2x8x8xf32> to vector<2x8xf32>
    %56 = vector.shape_cast %55 : vector<2x8xf32> to vector<2x8x1xf32>
    %57 = vector.broadcast %56 : vector<2x8x1xf32> to vector<2x8x8xf32>
    %58 = arith.subf %54, %57 : vector<2x8x8xf32>
    %59 = math.exp %58 : vector<2x8x8xf32>
    %cst_48 = arith.constant dense<0.000000e+00> : vector<2x8xf32>
    %60 = vector.multi_reduction <add>, %59, %cst_48 [2] : vector<2x8x8xf32> to vector<2x8xf32>
    %61 = vector.shape_cast %60 : vector<2x8xf32> to vector<2x8x1xf32>
    %62 = tpu.reciprocal %61 {approx = true} : vector<2x8x1xf32> -> vector<2x8x1xf32>
    %63 = vector.broadcast %62 : vector<2x8x1xf32> to vector<2x8x8xf32>
    %64 = arith.mulf %59, %63 : vector<2x8x8xf32>
    "tpu.trace_start"() <{level = 10 : i32, message = "bqk,bkd->bqd"}> : () -> ()
    %cst_49 = arith.constant dense<0.000000e+00> : vector<2x8x16xf32>
    %65 = tpu.matmul %64, %49, %cst_49 {dimension_numbers = #tpu.dot_dimension_numbers<[2], [1], [1], [2], [0, 0, 0, 1, 1, 2], [0], [0]>} : vector<2x8x8xf32>, vector<2x8x16xf32>, vector<2x8x16xf32> -> vector<2x8x16xf32>
    "tpu.trace_stop"() : () -> ()
    %66 = vector.shape_cast %65 : vector<2x8x16xf32> to vector<16x16xf32>
    %c0_50 = arith.constant 0 : index
    %c0_51 = arith.constant 0 : index
    %c0_52 = arith.constant 0 : index
    %c0_53 = arith.constant 0 : index
    %67 = vector.load %arg7[%c0_50, %c0_51, %c0_52, %c0_53] : memref<2x2x16x32xf32, #tpu.memory_space<vmem>>, vector<1x1x16x32xf32>
    %68 = vector.shape_cast %67 : vector<1x1x16x32xf32> to vector<16x32xf32>
    %cst_54 = arith.constant dense<0.000000e+00> : vector<16x32xf32>
    %69 = tpu.matmul %66, %68, %cst_54 {dimension_numbers = #tpu.dot_dimension_numbers<[1], [0], [0], [1], [0, 0, 1, 1], [], []>} : vector<16x16xf32>, vector<16x32xf32>, vector<16x32xf32> -> vector<16x32xf32>
    %70 = arith.addf %25, %69 : vector<16x32xf32>
    %c0_55 = arith.constant 0 : index
    %c0_56 = arith.constant 0 : index
    %c1_57 = arith.constant 1 : index
    %c0_58 = arith.constant 0 : index
    %c0_59 = arith.constant 0 : index
    %71 = vector.load %arg5[%c0_55, %c0_56, %c1_57, %c0_58, %c0_59] : memref<2x3x2x32x16xf32, #tpu.memory_space<vmem>>, vector<1x1x1x32x16xf32>
    %72 = vector.shape_cast %71 : vector<1x1x1x32x16xf32> to vector<32x16xf32>
    %cst_60 = arith.constant dense<0.000000e+00> : vector<16x16xf32>
    %73 = tpu.matmul %23, %72, %cst_60 {dimension_numbers = #tpu.dot_dimension_numbers<[1], [0], [0], [1], [0, 0, 1, 1], [], []>} : vector<16x32xf32>, vector<32x16xf32>, vector<16x16xf32> -> vector<16x16xf32>
    %c0_61 = arith.constant 0 : index
    %c0_62 = arith.constant 0 : index
    %c1_63 = arith.constant 1 : index
    %c0_64 = arith.constant 0 : index
    %c0_65 = arith.constant 0 : index
    %74 = vector.load %arg6[%c0_61, %c0_62, %c1_63, %c0_64, %c0_65] : memref<2x3x2x1x16xf32, #tpu.memory_space<vmem>>, vector<1x1x1x1x16xf32>
    %75 = vector.shape_cast %74 : vector<1x1x1x1x16xf32> to vector<1x16xf32>
    %76 = vector.broadcast %75 : vector<1x16xf32> to vector<16x16xf32>
    %77 = arith.addf %73, %76 : vector<16x16xf32>
    %c0_66 = arith.constant 0 : index
    %c1_67 = arith.constant 1 : index
    %c1_68 = arith.constant 1 : index
    %c0_69 = arith.constant 0 : index
    %c0_70 = arith.constant 0 : index
    %78 = vector.load %arg5[%c0_66, %c1_67, %c1_68, %c0_69, %c0_70] : memref<2x3x2x32x16xf32, #tpu.memory_space<vmem>>, vector<1x1x1x32x16xf32>
    %79 = vector.shape_cast %78 : vector<1x1x1x32x16xf32> to vector<32x16xf32>
    %cst_71 = arith.constant dense<0.000000e+00> : vector<16x16xf32>
    %80 = tpu.matmul %23, %79, %cst_71 {dimension_numbers = #tpu.dot_dimension_numbers<[1], [0], [0], [1], [0, 0, 1, 1], [], []>} : vector<16x32xf32>, vector<32x16xf32>, vector<16x16xf32> -> vector<16x16xf32>
    %c0_72 = arith.constant 0 : index
    %c1_73 = arith.constant 1 : index
    %c1_74 = arith.constant 1 : index
    %c0_75 = arith.constant 0 : index
    %c0_76 = arith.constant 0 : index
    %81 = vector.load %arg6[%c0_72, %c1_73, %c1_74, %c0_75, %c0_76] : memref<2x3x2x1x16xf32, #tpu.memory_space<vmem>>, vector<1x1x1x1x16xf32>
    %82 = vector.shape_cast %81 : vector<1x1x1x1x16xf32> to vector<1x16xf32>
    %83 = vector.broadcast %82 : vector<1x16xf32> to vector<16x16xf32>
    %84 = arith.addf %80, %83 : vector<16x16xf32>
    %c0_77 = arith.constant 0 : index
    %c2_78 = arith.constant 2 : index
    %c1_79 = arith.constant 1 : index
    %c0_80 = arith.constant 0 : index
    %c0_81 = arith.constant 0 : index
    %85 = vector.load %arg5[%c0_77, %c2_78, %c1_79, %c0_80, %c0_81] : memref<2x3x2x32x16xf32, #tpu.memory_space<vmem>>, vector<1x1x1x32x16xf32>
    %86 = vector.shape_cast %85 : vector<1x1x1x32x16xf32> to vector<32x16xf32>
    %cst_82 = arith.constant dense<0.000000e+00> : vector<16x16xf32>
    %87 = tpu.matmul %23, %86, %cst_82 {dimension_numbers = #tpu.dot_dimension_numbers<[1], [0], [0], [1], [0, 0, 1, 1], [], []>} : vector<16x32xf32>, vector<32x16xf32>, vector<16x16xf32> -> vector<16x16xf32>
    %c0_83 = arith.constant 0 : index
    %c2_84 = arith.constant 2 : index
    %c1_85 = arith.constant 1 : index
    %c0_86 = arith.constant 0 : index
    %c0_87 = arith.constant 0 : index
    %88 = vector.load %arg6[%c0_83, %c2_84, %c1_85, %c0_86, %c0_87] : memref<2x3x2x1x16xf32, #tpu.memory_space<vmem>>, vector<1x1x1x1x16xf32>
    %89 = vector.shape_cast %88 : vector<1x1x1x1x16xf32> to vector<1x16xf32>
    %90 = vector.broadcast %89 : vector<1x16xf32> to vector<16x16xf32>
    %91 = arith.addf %87, %90 : vector<16x16xf32>
    %92 = vector.shape_cast %77 : vector<16x16xf32> to vector<2x8x16xf32>
    %93 = vector.shape_cast %84 : vector<16x16xf32> to vector<2x8x16xf32>
    %94 = vector.shape_cast %91 : vector<16x16xf32> to vector<2x8x16xf32>
    "tpu.trace_start"() <{level = 10 : i32, message = "bqd,bkd->bqk"}> : () -> ()
    %cst_88 = arith.constant dense<0.000000e+00> : vector<2x8x8xf32>
    %95 = tpu.matmul %92, %93, %cst_88 {dimension_numbers = #tpu.dot_dimension_numbers<[2], [2], [1], [1], [0, 0, 0, 1, 1, 1], [0], [0]>} : vector<2x8x16xf32>, vector<2x8x16xf32>, vector<2x8x8xf32> -> vector<2x8x8xf32>
    "tpu.trace_stop"() : () -> ()
    %cst_89 = arith.constant 2.500000e-01 : f32
    %96 = vector.broadcast %cst_89 : f32 to vector<2x8x8xf32>
    %97 = arith.mulf %95, %96 : vector<2x8x8xf32>
    %98 = vector.broadcast %24 : vector<2x1x8xf32> to vector<2x8x8xf32>
    %99 = arith.addf %97, %98 : vector<2x8x8xf32>
    %cst_90 = arith.constant dense<0xFF800000> : vector<2x8xf32>
    %100 = vector.multi_reduction <maximumf>, %99, %cst_90 [2] : vector<2x8x8xf32> to vector<2x8xf32>
    %101 = vector.shape_cast %100 : vector<2x8xf32> to vector<2x8x1xf32>
    %102 = vector.broadcast %101 : vector<2x8x1xf32> to vector<2x8x8xf32>
    %103 = arith.subf %99, %102 : vector<2x8x8xf32>
    %104 = math.exp %103 : vector<2x8x8xf32>
    %cst_91 = arith.constant dense<0.000000e+00> : vector<2x8xf32>
    %105 = vector.multi_reduction <add>, %104, %cst_91 [2] : vector<2x8x8xf32> to vector<2x8xf32>
    %106 = vector.shape_cast %105 : vector<2x8xf32> to vector<2x8x1xf32>
    %107 = tpu.reciprocal %106 {approx = true} : vector<2x8x1xf32> -> vector<2x8x1xf32>
    %108 = vector.broadcast %107 : vector<2x8x1xf32> to vector<2x8x8xf32>
    %109 = arith.mulf %104, %108 : vector<2x8x8xf32>
    "tpu.trace_start"() <{level = 10 : i32, message = "bqk,bkd->bqd"}> : () -> ()
    %cst_92 = arith.constant dense<0.000000e+00> : vector<2x8x16xf32>
    %110 = tpu.matmul %109, %94, %cst_92 {dimension_numbers = #tpu.dot_dimension_numbers<[2], [1], [1], [2], [0, 0, 0, 1, 1, 2], [0], [0]>} : vector<2x8x8xf32>, vector<2x8x16xf32>, vector<2x8x16xf32> -> vector<2x8x16xf32>
    "tpu.trace_stop"() : () -> ()
    %111 = vector.shape_cast %110 : vector<2x8x16xf32> to vector<16x16xf32>
    %c0_93 = arith.constant 0 : index
    %c1_94 = arith.constant 1 : index
    %c0_95 = arith.constant 0 : index
    %c0_96 = arith.constant 0 : index
    %112 = vector.load %arg7[%c0_93, %c1_94, %c0_95, %c0_96] : memref<2x2x16x32xf32, #tpu.memory_space<vmem>>, vector<1x1x16x32xf32>
    %113 = vector.shape_cast %112 : vector<1x1x16x32xf32> to vector<16x32xf32>
    %cst_97 = arith.constant dense<0.000000e+00> : vector<16x32xf32>
    %114 = tpu.matmul %111, %113, %cst_97 {dimension_numbers = #tpu.dot_dimension_numbers<[1], [0], [0], [1], [0, 0, 1, 1], [], []>} : vector<16x16xf32>, vector<16x32xf32>, vector<16x32xf32> -> vector<16x32xf32>
    %115 = arith.addf %70, %114 : vector<16x32xf32>
    %c0_98 = arith.constant 0 : index
    %c0_99 = arith.constant 0 : index
    %c0_100 = arith.constant 0 : index
    %c0_101 = arith.constant 0 : index
    %116 = vector.load %arg11[%c0_98, %c0_99, %c0_100, %c0_101] : memref<2x6x1x32xf32, #tpu.memory_space<vmem>>, vector<1x1x1x32xf32>
    %117 = vector.shape_cast %116 : vector<1x1x1x32xf32> to vector<1x32xf32>
    %118 = vector.broadcast %117 : vector<1x32xf32> to vector<16x32xf32>
    %119 = arith.addf %115, %118 : vector<16x32xf32>
    %120 = arith.addf %119, %23 : vector<16x32xf32>
    %c0_102 = arith.constant 0 : index
    %c1_103 = arith.constant 1 : index
    %c0_104 = arith.constant 0 : index
    %c0_105 = arith.constant 0 : index
    %121 = vector.load %arg11[%c0_102, %c1_103, %c0_104, %c0_105] : memref<2x6x1x32xf32, #tpu.memory_space<vmem>>, vector<1x1x1x32xf32>
    %122 = vector.shape_cast %121 : vector<1x1x1x32xf32> to vector<1x32xf32>
    %c0_106 = arith.constant 0 : index
    %c2_107 = arith.constant 2 : index
    %c0_108 = arith.constant 0 : index
    %c0_109 = arith.constant 0 : index
    %123 = vector.load %arg11[%c0_106, %c2_107, %c0_108, %c0_109] : memref<2x6x1x32xf32, #tpu.memory_space<vmem>>, vector<1x1x1x32xf32>
    %124 = vector.shape_cast %123 : vector<1x1x1x32xf32> to vector<1x32xf32>
    %cst_110 = arith.constant dense<0.000000e+00> : vector<16xf32>
    %125 = vector.multi_reduction <add>, %120, %cst_110 [1] : vector<16x32xf32> to vector<16xf32>
    %126 = vector.shape_cast %125 : vector<16xf32> to vector<16x1xf32>
    %cst_111 = arith.constant 3.200000e+01 : f32
    %127 = vector.broadcast %cst_111 : f32 to vector<16x1xf32>
    %128 = arith.divf %126, %127 : vector<16x1xf32>
    %129 = vector.broadcast %128 : vector<16x1xf32> to vector<16x32xf32>
    %130 = arith.subf %120, %129 : vector<16x32xf32>
    %131 = arith.mulf %130, %130 : vector<16x32xf32>
    %cst_112 = arith.constant dense<0.000000e+00> : vector<16xf32>
    %132 = vector.multi_reduction <add>, %131, %cst_112 [1] : vector<16x32xf32> to vector<16xf32>
    %133 = vector.shape_cast %132 : vector<16xf32> to vector<16x1xf32>
    %cst_113 = arith.constant 3.200000e+01 : f32
    %134 = vector.broadcast %cst_113 : f32 to vector<16x1xf32>
    %135 = arith.divf %133, %134 : vector<16x1xf32>
    %cst_114 = arith.constant 9.99999974E-6 : f32
    %136 = vector.broadcast %cst_114 : f32 to vector<16x1xf32>
    %137 = arith.addf %135, %136 : vector<16x1xf32>
    %138 = math.rsqrt %137 : vector<16x1xf32>
    %139 = vector.broadcast %138 : vector<16x1xf32> to vector<16x32xf32>
    %140 = arith.mulf %130, %139 : vector<16x32xf32>
    %141 = vector.broadcast %122 : vector<1x32xf32> to vector<16x32xf32>
    %142 = arith.mulf %140, %141 : vector<16x32xf32>
    %143 = vector.broadcast %124 : vector<1x32xf32> to vector<16x32xf32>
    %144 = arith.addf %142, %143 : vector<16x32xf32>
    %c0_115 = arith.constant 0 : index
    %c0_116 = arith.constant 0 : index
    %c0_117 = arith.constant 0 : index
    %145 = vector.load %arg8[%c0_115, %c0_116, %c0_117] : memref<2x32x64xf32, #tpu.memory_space<vmem>>, vector<1x32x64xf32>
    %146 = vector.shape_cast %145 : vector<1x32x64xf32> to vector<32x64xf32>
    %cst_118 = arith.constant dense<0.000000e+00> : vector<16x64xf32>
    %147 = tpu.matmul %144, %146, %cst_118 {dimension_numbers = #tpu.dot_dimension_numbers<[1], [0], [0], [1], [0, 0, 1, 1], [], []>} : vector<16x32xf32>, vector<32x64xf32>, vector<16x64xf32> -> vector<16x64xf32>
    %c0_119 = arith.constant 0 : index
    %c0_120 = arith.constant 0 : index
    %c0_121 = arith.constant 0 : index
    %148 = vector.load %arg10[%c0_119, %c0_120, %c0_121] : memref<2x1x64xf32, #tpu.memory_space<vmem>>, vector<1x1x64xf32>
    %149 = vector.shape_cast %148 : vector<1x1x64xf32> to vector<1x64xf32>
    %150 = vector.broadcast %149 : vector<1x64xf32> to vector<16x64xf32>
    %151 = arith.addf %147, %150 : vector<16x64xf32>
    %cst_122 = arith.constant 5.000000e-01 : f32
    %152 = vector.broadcast %cst_122 : f32 to vector<16x64xf32>
    %153 = arith.mulf %152, %151 : vector<16x64xf32>
    %cst_123 = arith.constant 0.707106769 : f32
    %154 = vector.broadcast %cst_123 : f32 to vector<16x64xf32>
    %155 = arith.mulf %151, %154 : vector<16x64xf32>
    %156 = math.erf %155 : vector<16x64xf32>
    %cst_124 = arith.constant 1.000000e+00 : f32
    %157 = vector.broadcast %cst_124 : f32 to vector<16x64xf32>
    %158 = arith.addf %157, %156 : vector<16x64xf32>
    %159 = arith.mulf %153, %158 : vector<16x64xf32>
    %c0_125 = arith.constant 0 : index
    %c0_126 = arith.constant 0 : index
    %c0_127 = arith.constant 0 : index
    %160 = vector.load %arg9[%c0_125, %c0_126, %c0_127] : memref<2x64x32xf32, #tpu.memory_space<vmem>>, vector<1x64x32xf32>
    %161 = vector.shape_cast %160 : vector<1x64x32xf32> to vector<64x32xf32>
    %cst_128 = arith.constant dense<0.000000e+00> : vector<16x32xf32>
    %162 = tpu.matmul %159, %161, %cst_128 {dimension_numbers = #tpu.dot_dimension_numbers<[1], [0], [0], [1], [0, 0, 1, 1], [], []>} : vector<16x64xf32>, vector<64x32xf32>, vector<16x32xf32> -> vector<16x32xf32>
    %c0_129 = arith.constant 0 : index
    %c3 = arith.constant 3 : index
    %c0_130 = arith.constant 0 : index
    %c0_131 = arith.constant 0 : index
    %163 = vector.load %arg11[%c0_129, %c3, %c0_130, %c0_131] : memref<2x6x1x32xf32, #tpu.memory_space<vmem>>, vector<1x1x1x32xf32>
    %164 = vector.shape_cast %163 : vector<1x1x1x32xf32> to vector<1x32xf32>
    %165 = vector.broadcast %164 : vector<1x32xf32> to vector<16x32xf32>
    %166 = arith.addf %162, %165 : vector<16x32xf32>
    %167 = arith.addf %166, %144 : vector<16x32xf32>
    %c0_132 = arith.constant 0 : index
    %c4 = arith.constant 4 : index
    %c0_133 = arith.constant 0 : index
    %c0_134 = arith.constant 0 : index
    %168 = vector.load %arg11[%c0_132, %c4, %c0_133, %c0_134] : memref<2x6x1x32xf32, #tpu.memory_space<vmem>>, vector<1x1x1x32xf32>
    %169 = vector.shape_cast %168 : vector<1x1x1x32xf32> to vector<1x32xf32>
    %c0_135 = arith.constant 0 : index
    %c5 = arith.constant 5 : index
    %c0_136 = arith.constant 0 : index
    %c0_137 = arith.constant 0 : index
    %170 = vector.load %arg11[%c0_135, %c5, %c0_136, %c0_137] : memref<2x6x1x32xf32, #tpu.memory_space<vmem>>, vector<1x1x1x32xf32>
    %171 = vector.shape_cast %170 : vector<1x1x1x32xf32> to vector<1x32xf32>
    %cst_138 = arith.constant dense<0.000000e+00> : vector<16xf32>
    %172 = vector.multi_reduction <add>, %167, %cst_138 [1] : vector<16x32xf32> to vector<16xf32>
    %173 = vector.shape_cast %172 : vector<16xf32> to vector<16x1xf32>
    %cst_139 = arith.constant 3.200000e+01 : f32
    %174 = vector.broadcast %cst_139 : f32 to vector<16x1xf32>
    %175 = arith.divf %173, %174 : vector<16x1xf32>
    %176 = vector.broadcast %175 : vector<16x1xf32> to vector<16x32xf32>
    %177 = arith.subf %167, %176 : vector<16x32xf32>
    %178 = arith.mulf %177, %177 : vector<16x32xf32>
    %cst_140 = arith.constant dense<0.000000e+00> : vector<16xf32>
    %179 = vector.multi_reduction <add>, %178, %cst_140 [1] : vector<16x32xf32> to vector<16xf32>
    %180 = vector.shape_cast %179 : vector<16xf32> to vector<16x1xf32>
    %cst_141 = arith.constant 3.200000e+01 : f32
    %181 = vector.broadcast %cst_141 : f32 to vector<16x1xf32>
    %182 = arith.divf %180, %181 : vector<16x1xf32>
    %cst_142 = arith.constant 9.99999974E-6 : f32
    %183 = vector.broadcast %cst_142 : f32 to vector<16x1xf32>
    %184 = arith.addf %182, %183 : vector<16x1xf32>
    %185 = math.rsqrt %184 : vector<16x1xf32>
    %186 = vector.broadcast %185 : vector<16x1xf32> to vector<16x32xf32>
    %187 = arith.mulf %177, %186 : vector<16x32xf32>
    %188 = vector.broadcast %169 : vector<1x32xf32> to vector<16x32xf32>
    %189 = arith.mulf %187, %188 : vector<16x32xf32>
    %190 = vector.broadcast %171 : vector<1x32xf32> to vector<16x32xf32>
    %191 = arith.addf %189, %190 : vector<16x32xf32>
    %cst_143 = arith.constant 0.000000e+00 : f32
    %192 = vector.broadcast %cst_143 : f32 to vector<16x32xf32>
    %c1_144 = arith.constant 1 : index
    %c0_145 = arith.constant 0 : index
    %c0_146 = arith.constant 0 : index
    %c0_147 = arith.constant 0 : index
    %c0_148 = arith.constant 0 : index
    %193 = vector.load %arg5[%c1_144, %c0_145, %c0_146, %c0_147, %c0_148] : memref<2x3x2x32x16xf32, #tpu.memory_space<vmem>>, vector<1x1x1x32x16xf32>
    %194 = vector.shape_cast %193 : vector<1x1x1x32x16xf32> to vector<32x16xf32>
    %cst_149 = arith.constant dense<0.000000e+00> : vector<16x16xf32>
    %195 = tpu.matmul %191, %194, %cst_149 {dimension_numbers = #tpu.dot_dimension_numbers<[1], [0], [0], [1], [0, 0, 1, 1], [], []>} : vector<16x32xf32>, vector<32x16xf32>, vector<16x16xf32> -> vector<16x16xf32>
    %c1_150 = arith.constant 1 : index
    %c0_151 = arith.constant 0 : index
    %c0_152 = arith.constant 0 : index
    %c0_153 = arith.constant 0 : index
    %c0_154 = arith.constant 0 : index
    %196 = vector.load %arg6[%c1_150, %c0_151, %c0_152, %c0_153, %c0_154] : memref<2x3x2x1x16xf32, #tpu.memory_space<vmem>>, vector<1x1x1x1x16xf32>
    %197 = vector.shape_cast %196 : vector<1x1x1x1x16xf32> to vector<1x16xf32>
    %198 = vector.broadcast %197 : vector<1x16xf32> to vector<16x16xf32>
    %199 = arith.addf %195, %198 : vector<16x16xf32>
    %c1_155 = arith.constant 1 : index
    %c1_156 = arith.constant 1 : index
    %c0_157 = arith.constant 0 : index
    %c0_158 = arith.constant 0 : index
    %c0_159 = arith.constant 0 : index
    %200 = vector.load %arg5[%c1_155, %c1_156, %c0_157, %c0_158, %c0_159] : memref<2x3x2x32x16xf32, #tpu.memory_space<vmem>>, vector<1x1x1x32x16xf32>
    %201 = vector.shape_cast %200 : vector<1x1x1x32x16xf32> to vector<32x16xf32>
    %cst_160 = arith.constant dense<0.000000e+00> : vector<16x16xf32>
    %202 = tpu.matmul %191, %201, %cst_160 {dimension_numbers = #tpu.dot_dimension_numbers<[1], [0], [0], [1], [0, 0, 1, 1], [], []>} : vector<16x32xf32>, vector<32x16xf32>, vector<16x16xf32> -> vector<16x16xf32>
    %c1_161 = arith.constant 1 : index
    %c1_162 = arith.constant 1 : index
    %c0_163 = arith.constant 0 : index
    %c0_164 = arith.constant 0 : index
    %c0_165 = arith.constant 0 : index
    %203 = vector.load %arg6[%c1_161, %c1_162, %c0_163, %c0_164, %c0_165] : memref<2x3x2x1x16xf32, #tpu.memory_space<vmem>>, vector<1x1x1x1x16xf32>
    %204 = vector.shape_cast %203 : vector<1x1x1x1x16xf32> to vector<1x16xf32>
    %205 = vector.broadcast %204 : vector<1x16xf32> to vector<16x16xf32>
    %206 = arith.addf %202, %205 : vector<16x16xf32>
    %c1_166 = arith.constant 1 : index
    %c2_167 = arith.constant 2 : index
    %c0_168 = arith.constant 0 : index
    %c0_169 = arith.constant 0 : index
    %c0_170 = arith.constant 0 : index
    %207 = vector.load %arg5[%c1_166, %c2_167, %c0_168, %c0_169, %c0_170] : memref<2x3x2x32x16xf32, #tpu.memory_space<vmem>>, vector<1x1x1x32x16xf32>
    %208 = vector.shape_cast %207 : vector<1x1x1x32x16xf32> to vector<32x16xf32>
    %cst_171 = arith.constant dense<0.000000e+00> : vector<16x16xf32>
    %209 = tpu.matmul %191, %208, %cst_171 {dimension_numbers = #tpu.dot_dimension_numbers<[1], [0], [0], [1], [0, 0, 1, 1], [], []>} : vector<16x32xf32>, vector<32x16xf32>, vector<16x16xf32> -> vector<16x16xf32>
    %c1_172 = arith.constant 1 : index
    %c2_173 = arith.constant 2 : index
    %c0_174 = arith.constant 0 : index
    %c0_175 = arith.constant 0 : index
    %c0_176 = arith.constant 0 : index
    %210 = vector.load %arg6[%c1_172, %c2_173, %c0_174, %c0_175, %c0_176] : memref<2x3x2x1x16xf32, #tpu.memory_space<vmem>>, vector<1x1x1x1x16xf32>
    %211 = vector.shape_cast %210 : vector<1x1x1x1x16xf32> to vector<1x16xf32>
    %212 = vector.broadcast %211 : vector<1x16xf32> to vector<16x16xf32>
    %213 = arith.addf %209, %212 : vector<16x16xf32>
    %214 = vector.shape_cast %199 : vector<16x16xf32> to vector<2x8x16xf32>
    %215 = vector.shape_cast %206 : vector<16x16xf32> to vector<2x8x16xf32>
    %216 = vector.shape_cast %213 : vector<16x16xf32> to vector<2x8x16xf32>
    "tpu.trace_start"() <{level = 10 : i32, message = "bqd,bkd->bqk"}> : () -> ()
    %cst_177 = arith.constant dense<0.000000e+00> : vector<2x8x8xf32>
    %217 = tpu.matmul %214, %215, %cst_177 {dimension_numbers = #tpu.dot_dimension_numbers<[2], [2], [1], [1], [0, 0, 0, 1, 1, 1], [0], [0]>} : vector<2x8x16xf32>, vector<2x8x16xf32>, vector<2x8x8xf32> -> vector<2x8x8xf32>
    "tpu.trace_stop"() : () -> ()
    %cst_178 = arith.constant 2.500000e-01 : f32
    %218 = vector.broadcast %cst_178 : f32 to vector<2x8x8xf32>
    %219 = arith.mulf %217, %218 : vector<2x8x8xf32>
    %220 = vector.broadcast %24 : vector<2x1x8xf32> to vector<2x8x8xf32>
    %221 = arith.addf %219, %220 : vector<2x8x8xf32>
    %cst_179 = arith.constant dense<0xFF800000> : vector<2x8xf32>
    %222 = vector.multi_reduction <maximumf>, %221, %cst_179 [2] : vector<2x8x8xf32> to vector<2x8xf32>
    %223 = vector.shape_cast %222 : vector<2x8xf32> to vector<2x8x1xf32>
    %224 = vector.broadcast %223 : vector<2x8x1xf32> to vector<2x8x8xf32>
    %225 = arith.subf %221, %224 : vector<2x8x8xf32>
    %226 = math.exp %225 : vector<2x8x8xf32>
    %cst_180 = arith.constant dense<0.000000e+00> : vector<2x8xf32>
    %227 = vector.multi_reduction <add>, %226, %cst_180 [2] : vector<2x8x8xf32> to vector<2x8xf32>
    %228 = vector.shape_cast %227 : vector<2x8xf32> to vector<2x8x1xf32>
    %229 = tpu.reciprocal %228 {approx = true} : vector<2x8x1xf32> -> vector<2x8x1xf32>
    %230 = vector.broadcast %229 : vector<2x8x1xf32> to vector<2x8x8xf32>
    %231 = arith.mulf %226, %230 : vector<2x8x8xf32>
    "tpu.trace_start"() <{level = 10 : i32, message = "bqk,bkd->bqd"}> : () -> ()
    %cst_181 = arith.constant dense<0.000000e+00> : vector<2x8x16xf32>
    %232 = tpu.matmul %231, %216, %cst_181 {dimension_numbers = #tpu.dot_dimension_numbers<[2], [1], [1], [2], [0, 0, 0, 1, 1, 2], [0], [0]>} : vector<2x8x8xf32>, vector<2x8x16xf32>, vector<2x8x16xf32> -> vector<2x8x16xf32>
    "tpu.trace_stop"() : () -> ()
    %233 = vector.shape_cast %232 : vector<2x8x16xf32> to vector<16x16xf32>
    %c1_182 = arith.constant 1 : index
    %c0_183 = arith.constant 0 : index
    %c0_184 = arith.constant 0 : index
    %c0_185 = arith.constant 0 : index
    %234 = vector.load %arg7[%c1_182, %c0_183, %c0_184, %c0_185] : memref<2x2x16x32xf32, #tpu.memory_space<vmem>>, vector<1x1x16x32xf32>
    %235 = vector.shape_cast %234 : vector<1x1x16x32xf32> to vector<16x32xf32>
    %cst_186 = arith.constant dense<0.000000e+00> : vector<16x32xf32>
    %236 = tpu.matmul %233, %235, %cst_186 {dimension_numbers = #tpu.dot_dimension_numbers<[1], [0], [0], [1], [0, 0, 1, 1], [], []>} : vector<16x16xf32>, vector<16x32xf32>, vector<16x32xf32> -> vector<16x32xf32>
    %237 = arith.addf %192, %236 : vector<16x32xf32>
    %c1_187 = arith.constant 1 : index
    %c0_188 = arith.constant 0 : index
    %c1_189 = arith.constant 1 : index
    %c0_190 = arith.constant 0 : index
    %c0_191 = arith.constant 0 : index
    %238 = vector.load %arg5[%c1_187, %c0_188, %c1_189, %c0_190, %c0_191] : memref<2x3x2x32x16xf32, #tpu.memory_space<vmem>>, vector<1x1x1x32x16xf32>
    %239 = vector.shape_cast %238 : vector<1x1x1x32x16xf32> to vector<32x16xf32>
    %cst_192 = arith.constant dense<0.000000e+00> : vector<16x16xf32>
    %240 = tpu.matmul %191, %239, %cst_192 {dimension_numbers = #tpu.dot_dimension_numbers<[1], [0], [0], [1], [0, 0, 1, 1], [], []>} : vector<16x32xf32>, vector<32x16xf32>, vector<16x16xf32> -> vector<16x16xf32>
    %c1_193 = arith.constant 1 : index
    %c0_194 = arith.constant 0 : index
    %c1_195 = arith.constant 1 : index
    %c0_196 = arith.constant 0 : index
    %c0_197 = arith.constant 0 : index
    %241 = vector.load %arg6[%c1_193, %c0_194, %c1_195, %c0_196, %c0_197] : memref<2x3x2x1x16xf32, #tpu.memory_space<vmem>>, vector<1x1x1x1x16xf32>
    %242 = vector.shape_cast %241 : vector<1x1x1x1x16xf32> to vector<1x16xf32>
    %243 = vector.broadcast %242 : vector<1x16xf32> to vector<16x16xf32>
    %244 = arith.addf %240, %243 : vector<16x16xf32>
    %c1_198 = arith.constant 1 : index
    %c1_199 = arith.constant 1 : index
    %c1_200 = arith.constant 1 : index
    %c0_201 = arith.constant 0 : index
    %c0_202 = arith.constant 0 : index
    %245 = vector.load %arg5[%c1_198, %c1_199, %c1_200, %c0_201, %c0_202] : memref<2x3x2x32x16xf32, #tpu.memory_space<vmem>>, vector<1x1x1x32x16xf32>
    %246 = vector.shape_cast %245 : vector<1x1x1x32x16xf32> to vector<32x16xf32>
    %cst_203 = arith.constant dense<0.000000e+00> : vector<16x16xf32>
    %247 = tpu.matmul %191, %246, %cst_203 {dimension_numbers = #tpu.dot_dimension_numbers<[1], [0], [0], [1], [0, 0, 1, 1], [], []>} : vector<16x32xf32>, vector<32x16xf32>, vector<16x16xf32> -> vector<16x16xf32>
    %c1_204 = arith.constant 1 : index
    %c1_205 = arith.constant 1 : index
    %c1_206 = arith.constant 1 : index
    %c0_207 = arith.constant 0 : index
    %c0_208 = arith.constant 0 : index
    %248 = vector.load %arg6[%c1_204, %c1_205, %c1_206, %c0_207, %c0_208] : memref<2x3x2x1x16xf32, #tpu.memory_space<vmem>>, vector<1x1x1x1x16xf32>
    %249 = vector.shape_cast %248 : vector<1x1x1x1x16xf32> to vector<1x16xf32>
    %250 = vector.broadcast %249 : vector<1x16xf32> to vector<16x16xf32>
    %251 = arith.addf %247, %250 : vector<16x16xf32>
    %c1_209 = arith.constant 1 : index
    %c2_210 = arith.constant 2 : index
    %c1_211 = arith.constant 1 : index
    %c0_212 = arith.constant 0 : index
    %c0_213 = arith.constant 0 : index
    %252 = vector.load %arg5[%c1_209, %c2_210, %c1_211, %c0_212, %c0_213] : memref<2x3x2x32x16xf32, #tpu.memory_space<vmem>>, vector<1x1x1x32x16xf32>
    %253 = vector.shape_cast %252 : vector<1x1x1x32x16xf32> to vector<32x16xf32>
    %cst_214 = arith.constant dense<0.000000e+00> : vector<16x16xf32>
    %254 = tpu.matmul %191, %253, %cst_214 {dimension_numbers = #tpu.dot_dimension_numbers<[1], [0], [0], [1], [0, 0, 1, 1], [], []>} : vector<16x32xf32>, vector<32x16xf32>, vector<16x16xf32> -> vector<16x16xf32>
    %c1_215 = arith.constant 1 : index
    %c2_216 = arith.constant 2 : index
    %c1_217 = arith.constant 1 : index
    %c0_218 = arith.constant 0 : index
    %c0_219 = arith.constant 0 : index
    %255 = vector.load %arg6[%c1_215, %c2_216, %c1_217, %c0_218, %c0_219] : memref<2x3x2x1x16xf32, #tpu.memory_space<vmem>>, vector<1x1x1x1x16xf32>
    %256 = vector.shape_cast %255 : vector<1x1x1x1x16xf32> to vector<1x16xf32>
    %257 = vector.broadcast %256 : vector<1x16xf32> to vector<16x16xf32>
    %258 = arith.addf %254, %257 : vector<16x16xf32>
    %259 = vector.shape_cast %244 : vector<16x16xf32> to vector<2x8x16xf32>
    %260 = vector.shape_cast %251 : vector<16x16xf32> to vector<2x8x16xf32>
    %261 = vector.shape_cast %258 : vector<16x16xf32> to vector<2x8x16xf32>
    "tpu.trace_start"() <{level = 10 : i32, message = "bqd,bkd->bqk"}> : () -> ()
    %cst_220 = arith.constant dense<0.000000e+00> : vector<2x8x8xf32>
    %262 = tpu.matmul %259, %260, %cst_220 {dimension_numbers = #tpu.dot_dimension_numbers<[2], [2], [1], [1], [0, 0, 0, 1, 1, 1], [0], [0]>} : vector<2x8x16xf32>, vector<2x8x16xf32>, vector<2x8x8xf32> -> vector<2x8x8xf32>
    "tpu.trace_stop"() : () -> ()
    %cst_221 = arith.constant 2.500000e-01 : f32
    %263 = vector.broadcast %cst_221 : f32 to vector<2x8x8xf32>
    %264 = arith.mulf %262, %263 : vector<2x8x8xf32>
    %265 = vector.broadcast %24 : vector<2x1x8xf32> to vector<2x8x8xf32>
    %266 = arith.addf %264, %265 : vector<2x8x8xf32>
    %cst_222 = arith.constant dense<0xFF800000> : vector<2x8xf32>
    %267 = vector.multi_reduction <maximumf>, %266, %cst_222 [2] : vector<2x8x8xf32> to vector<2x8xf32>
    %268 = vector.shape_cast %267 : vector<2x8xf32> to vector<2x8x1xf32>
    %269 = vector.broadcast %268 : vector<2x8x1xf32> to vector<2x8x8xf32>
    %270 = arith.subf %266, %269 : vector<2x8x8xf32>
    %271 = math.exp %270 : vector<2x8x8xf32>
    %cst_223 = arith.constant dense<0.000000e+00> : vector<2x8xf32>
    %272 = vector.multi_reduction <add>, %271, %cst_223 [2] : vector<2x8x8xf32> to vector<2x8xf32>
    %273 = vector.shape_cast %272 : vector<2x8xf32> to vector<2x8x1xf32>
    %274 = tpu.reciprocal %273 {approx = true} : vector<2x8x1xf32> -> vector<2x8x1xf32>
    %275 = vector.broadcast %274 : vector<2x8x1xf32> to vector<2x8x8xf32>
    %276 = arith.mulf %271, %275 : vector<2x8x8xf32>
    "tpu.trace_start"() <{level = 10 : i32, message = "bqk,bkd->bqd"}> : () -> ()
    %cst_224 = arith.constant dense<0.000000e+00> : vector<2x8x16xf32>
    %277 = tpu.matmul %276, %261, %cst_224 {dimension_numbers = #tpu.dot_dimension_numbers<[2], [1], [1], [2], [0, 0, 0, 1, 1, 2], [0], [0]>} : vector<2x8x8xf32>, vector<2x8x16xf32>, vector<2x8x16xf32> -> vector<2x8x16xf32>
    "tpu.trace_stop"() : () -> ()
    %278 = vector.shape_cast %277 : vector<2x8x16xf32> to vector<16x16xf32>
    %c1_225 = arith.constant 1 : index
    %c1_226 = arith.constant 1 : index
    %c0_227 = arith.constant 0 : index
    %c0_228 = arith.constant 0 : index
    %279 = vector.load %arg7[%c1_225, %c1_226, %c0_227, %c0_228] : memref<2x2x16x32xf32, #tpu.memory_space<vmem>>, vector<1x1x16x32xf32>
    %280 = vector.shape_cast %279 : vector<1x1x16x32xf32> to vector<16x32xf32>
    %cst_229 = arith.constant dense<0.000000e+00> : vector<16x32xf32>
    %281 = tpu.matmul %278, %280, %cst_229 {dimension_numbers = #tpu.dot_dimension_numbers<[1], [0], [0], [1], [0, 0, 1, 1], [], []>} : vector<16x16xf32>, vector<16x32xf32>, vector<16x32xf32> -> vector<16x32xf32>
    %282 = arith.addf %237, %281 : vector<16x32xf32>
    %c1_230 = arith.constant 1 : index
    %c0_231 = arith.constant 0 : index
    %c0_232 = arith.constant 0 : index
    %c0_233 = arith.constant 0 : index
    %283 = vector.load %arg11[%c1_230, %c0_231, %c0_232, %c0_233] : memref<2x6x1x32xf32, #tpu.memory_space<vmem>>, vector<1x1x1x32xf32>
    %284 = vector.shape_cast %283 : vector<1x1x1x32xf32> to vector<1x32xf32>
    %285 = vector.broadcast %284 : vector<1x32xf32> to vector<16x32xf32>
    %286 = arith.addf %282, %285 : vector<16x32xf32>
    %287 = arith.addf %286, %191 : vector<16x32xf32>
    %c1_234 = arith.constant 1 : index
    %c1_235 = arith.constant 1 : index
    %c0_236 = arith.constant 0 : index
    %c0_237 = arith.constant 0 : index
    %288 = vector.load %arg11[%c1_234, %c1_235, %c0_236, %c0_237] : memref<2x6x1x32xf32, #tpu.memory_space<vmem>>, vector<1x1x1x32xf32>
    %289 = vector.shape_cast %288 : vector<1x1x1x32xf32> to vector<1x32xf32>
    %c1_238 = arith.constant 1 : index
    %c2_239 = arith.constant 2 : index
    %c0_240 = arith.constant 0 : index
    %c0_241 = arith.constant 0 : index
    %290 = vector.load %arg11[%c1_238, %c2_239, %c0_240, %c0_241] : memref<2x6x1x32xf32, #tpu.memory_space<vmem>>, vector<1x1x1x32xf32>
    %291 = vector.shape_cast %290 : vector<1x1x1x32xf32> to vector<1x32xf32>
    %cst_242 = arith.constant dense<0.000000e+00> : vector<16xf32>
    %292 = vector.multi_reduction <add>, %287, %cst_242 [1] : vector<16x32xf32> to vector<16xf32>
    %293 = vector.shape_cast %292 : vector<16xf32> to vector<16x1xf32>
    %cst_243 = arith.constant 3.200000e+01 : f32
    %294 = vector.broadcast %cst_243 : f32 to vector<16x1xf32>
    %295 = arith.divf %293, %294 : vector<16x1xf32>
    %296 = vector.broadcast %295 : vector<16x1xf32> to vector<16x32xf32>
    %297 = arith.subf %287, %296 : vector<16x32xf32>
    %298 = arith.mulf %297, %297 : vector<16x32xf32>
    %cst_244 = arith.constant dense<0.000000e+00> : vector<16xf32>
    %299 = vector.multi_reduction <add>, %298, %cst_244 [1] : vector<16x32xf32> to vector<16xf32>
    %300 = vector.shape_cast %299 : vector<16xf32> to vector<16x1xf32>
    %cst_245 = arith.constant 3.200000e+01 : f32
    %301 = vector.broadcast %cst_245 : f32 to vector<16x1xf32>
    %302 = arith.divf %300, %301 : vector<16x1xf32>
    %cst_246 = arith.constant 9.99999974E-6 : f32
    %303 = vector.broadcast %cst_246 : f32 to vector<16x1xf32>
    %304 = arith.addf %302, %303 : vector<16x1xf32>
    %305 = math.rsqrt %304 : vector<16x1xf32>
    %306 = vector.broadcast %305 : vector<16x1xf32> to vector<16x32xf32>
    %307 = arith.mulf %297, %306 : vector<16x32xf32>
    %308 = vector.broadcast %289 : vector<1x32xf32> to vector<16x32xf32>
    %309 = arith.mulf %307, %308 : vector<16x32xf32>
    %310 = vector.broadcast %291 : vector<1x32xf32> to vector<16x32xf32>
    %311 = arith.addf %309, %310 : vector<16x32xf32>
    %c1_247 = arith.constant 1 : index
    %c0_248 = arith.constant 0 : index
    %c0_249 = arith.constant 0 : index
    %312 = vector.load %arg8[%c1_247, %c0_248, %c0_249] : memref<2x32x64xf32, #tpu.memory_space<vmem>>, vector<1x32x64xf32>
    %313 = vector.shape_cast %312 : vector<1x32x64xf32> to vector<32x64xf32>
    %cst_250 = arith.constant dense<0.000000e+00> : vector<16x64xf32>
    %314 = tpu.matmul %311, %313, %cst_250 {dimension_numbers = #tpu.dot_dimension_numbers<[1], [0], [0], [1], [0, 0, 1, 1], [], []>} : vector<16x32xf32>, vector<32x64xf32>, vector<16x64xf32> -> vector<16x64xf32>
    %c1_251 = arith.constant 1 : index
    %c0_252 = arith.constant 0 : index
    %c0_253 = arith.constant 0 : index
    %315 = vector.load %arg10[%c1_251, %c0_252, %c0_253] : memref<2x1x64xf32, #tpu.memory_space<vmem>>, vector<1x1x64xf32>
    %316 = vector.shape_cast %315 : vector<1x1x64xf32> to vector<1x64xf32>
    %317 = vector.broadcast %316 : vector<1x64xf32> to vector<16x64xf32>
    %318 = arith.addf %314, %317 : vector<16x64xf32>
    %cst_254 = arith.constant 5.000000e-01 : f32
    %319 = vector.broadcast %cst_254 : f32 to vector<16x64xf32>
    %320 = arith.mulf %319, %318 : vector<16x64xf32>
    %cst_255 = arith.constant 0.707106769 : f32
    %321 = vector.broadcast %cst_255 : f32 to vector<16x64xf32>
    %322 = arith.mulf %318, %321 : vector<16x64xf32>
    %323 = math.erf %322 : vector<16x64xf32>
    %cst_256 = arith.constant 1.000000e+00 : f32
    %324 = vector.broadcast %cst_256 : f32 to vector<16x64xf32>
    %325 = arith.addf %324, %323 : vector<16x64xf32>
    %326 = arith.mulf %320, %325 : vector<16x64xf32>
    %c1_257 = arith.constant 1 : index
    %c0_258 = arith.constant 0 : index
    %c0_259 = arith.constant 0 : index
    %327 = vector.load %arg9[%c1_257, %c0_258, %c0_259] : memref<2x64x32xf32, #tpu.memory_space<vmem>>, vector<1x64x32xf32>
    %328 = vector.shape_cast %327 : vector<1x64x32xf32> to vector<64x32xf32>
    %cst_260 = arith.constant dense<0.000000e+00> : vector<16x32xf32>
    %329 = tpu.matmul %326, %328, %cst_260 {dimension_numbers = #tpu.dot_dimension_numbers<[1], [0], [0], [1], [0, 0, 1, 1], [], []>} : vector<16x64xf32>, vector<64x32xf32>, vector<16x32xf32> -> vector<16x32xf32>
    %c1_261 = arith.constant 1 : index
    %c3_262 = arith.constant 3 : index
    %c0_263 = arith.constant 0 : index
    %c0_264 = arith.constant 0 : index
    %330 = vector.load %arg11[%c1_261, %c3_262, %c0_263, %c0_264] : memref<2x6x1x32xf32, #tpu.memory_space<vmem>>, vector<1x1x1x32xf32>
    %331 = vector.shape_cast %330 : vector<1x1x1x32xf32> to vector<1x32xf32>
    %332 = vector.broadcast %331 : vector<1x32xf32> to vector<16x32xf32>
    %333 = arith.addf %329, %332 : vector<16x32xf32>
    %334 = arith.addf %333, %311 : vector<16x32xf32>
    %c1_265 = arith.constant 1 : index
    %c4_266 = arith.constant 4 : index
    %c0_267 = arith.constant 0 : index
    %c0_268 = arith.constant 0 : index
    %335 = vector.load %arg11[%c1_265, %c4_266, %c0_267, %c0_268] : memref<2x6x1x32xf32, #tpu.memory_space<vmem>>, vector<1x1x1x32xf32>
    %336 = vector.shape_cast %335 : vector<1x1x1x32xf32> to vector<1x32xf32>
    %c1_269 = arith.constant 1 : index
    %c5_270 = arith.constant 5 : index
    %c0_271 = arith.constant 0 : index
    %c0_272 = arith.constant 0 : index
    %337 = vector.load %arg11[%c1_269, %c5_270, %c0_271, %c0_272] : memref<2x6x1x32xf32, #tpu.memory_space<vmem>>, vector<1x1x1x32xf32>
    %338 = vector.shape_cast %337 : vector<1x1x1x32xf32> to vector<1x32xf32>
    %cst_273 = arith.constant dense<0.000000e+00> : vector<16xf32>
    %339 = vector.multi_reduction <add>, %334, %cst_273 [1] : vector<16x32xf32> to vector<16xf32>
    %340 = vector.shape_cast %339 : vector<16xf32> to vector<16x1xf32>
    %cst_274 = arith.constant 3.200000e+01 : f32
    %341 = vector.broadcast %cst_274 : f32 to vector<16x1xf32>
    %342 = arith.divf %340, %341 : vector<16x1xf32>
    %343 = vector.broadcast %342 : vector<16x1xf32> to vector<16x32xf32>
    %344 = arith.subf %334, %343 : vector<16x32xf32>
    %345 = arith.mulf %344, %344 : vector<16x32xf32>
    %cst_275 = arith.constant dense<0.000000e+00> : vector<16xf32>
    %346 = vector.multi_reduction <add>, %345, %cst_275 [1] : vector<16x32xf32> to vector<16xf32>
    %347 = vector.shape_cast %346 : vector<16xf32> to vector<16x1xf32>
    %cst_276 = arith.constant 3.200000e+01 : f32
    %348 = vector.broadcast %cst_276 : f32 to vector<16x1xf32>
    %349 = arith.divf %347, %348 : vector<16x1xf32>
    %cst_277 = arith.constant 9.99999974E-6 : f32
    %350 = vector.broadcast %cst_277 : f32 to vector<16x1xf32>
    %351 = arith.addf %349, %350 : vector<16x1xf32>
    %352 = math.rsqrt %351 : vector<16x1xf32>
    %353 = vector.broadcast %352 : vector<16x1xf32> to vector<16x32xf32>
    %354 = arith.mulf %344, %353 : vector<16x32xf32>
    %355 = vector.broadcast %336 : vector<1x32xf32> to vector<16x32xf32>
    %356 = arith.mulf %354, %355 : vector<16x32xf32>
    %357 = vector.broadcast %338 : vector<1x32xf32> to vector<16x32xf32>
    %358 = arith.addf %356, %357 : vector<16x32xf32>
    %359 = vector.shape_cast %358 : vector<16x32xf32> to vector<2x8x32xf32>
    %360 = vector.extract_strided_slice %359 {offsets = [0, 0, 0], sizes = [2, 1, 32], strides = [1, 1, 1]} : vector<2x8x32xf32> to vector<2x1x32xf32>
    %361 = vector.shape_cast %360 : vector<2x1x32xf32> to vector<2x32xf32>
    %c0_278 = arith.constant 0 : index
    %c0_279 = arith.constant 0 : index
    %362 = vector.load %arg12[%c0_278, %c0_279] : memref<32x32xf32, #tpu.memory_space<vmem>>, vector<32x32xf32>
    %cst_280 = arith.constant dense<0.000000e+00> : vector<2x32xf32>
    %363 = tpu.matmul %361, %362, %cst_280 {dimension_numbers = #tpu.dot_dimension_numbers<[1], [0], [0], [1], [0, 0, 1, 1], [], []>} : vector<2x32xf32>, vector<32x32xf32>, vector<2x32xf32> -> vector<2x32xf32>
    %c0_281 = arith.constant 0 : index
    %c0_282 = arith.constant 0 : index
    %364 = vector.load %arg13[%c0_281, %c0_282] : memref<1x32xf32, #tpu.memory_space<vmem>>, vector<1x32xf32>
    %365 = vector.broadcast %364 : vector<1x32xf32> to vector<2x32xf32>
    %366 = arith.addf %363, %365 : vector<2x32xf32>
    %367 = math.tanh %366 : vector<2x32xf32>
    %c0_283 = arith.constant 0 : index
    %c0_284 = arith.constant 0 : index
    %368 = vector.load %arg14[%c0_283, %c0_284] : memref<32x128xf32, #tpu.memory_space<vmem>>, vector<32x128xf32>
    %cst_285 = arith.constant dense<0.000000e+00> : vector<2x128xf32>
    %369 = tpu.matmul %367, %368, %cst_285 {dimension_numbers = #tpu.dot_dimension_numbers<[1], [0], [0], [1], [0, 0, 1, 1], [], []>} : vector<2x32xf32>, vector<32x128xf32>, vector<2x128xf32> -> vector<2x128xf32>
    %c0_286 = arith.constant 0 : index
    %c0_287 = arith.constant 0 : index
    %370 = vector.load %arg15[%c0_286, %c0_287] : memref<1x128xf32, #tpu.memory_space<vmem>>, vector<1x128xf32>
    %371 = vector.broadcast %370 : vector<1x128xf32> to vector<2x128xf32>
    %372 = arith.addf %369, %371 : vector<2x128xf32>
    %373 = vector.shape_cast %372 : vector<2x128xf32> to vector<2x1x128xf32>
    %c0_288 = arith.constant 0 : index
    %c0_289 = arith.constant 0 : index
    %c0_290 = arith.constant 0 : index
    %374 = vector.load %arg16[%c0_288, %c0_289, %c0_290] : memref<2x1x128xf32, #tpu.memory_space<vmem>>, vector<2x1x128xf32>
    tpu.vector_store %arg16[%c0_288, %c0_289, %c0_290], %373 {strides = array<i32>} : memref<2x1x128xf32, #tpu.memory_space<vmem>>, vector<2x1x128xf32>,
    return
  }
  func.func @transform_0(%arg0: i32) -> (i32, i32, i32) {
    %c0_i32 = arith.constant 0 : i32
    %c0_i32_0 = arith.constant 0 : i32
    %c0_i32_1 = arith.constant 0 : i32
    return %arg0, %c0_i32, %c0_i32_0 : i32, i32, i32
  }
  func.func @transform_1(%arg0: i32) -> (i32, i32, i32) {
    %c0_i32 = arith.constant 0 : i32
    %c0_i32_0 = arith.constant 0 : i32
    %c0_i32_1 = arith.constant 0 : i32
    return %arg0, %c0_i32, %c0_i32_0 : i32, i32, i32
  }
  func.func @transform_2(%arg0: i32) -> (i32, i32) {
    %c0_i32 = arith.constant 0 : i32
    %c0_i32_0 = arith.constant 0 : i32
    %c0_i32_1 = arith.constant 0 : i32
    return %c0_i32, %c0_i32_0 : i32, i32
  }
  func.func @transform_3(%arg0: i32) -> (i32, i32) {
    %c0_i32 = arith.constant 0 : i32
    %c0_i32_0 = arith.constant 0 : i32
    %c0_i32_1 = arith.constant 0 : i32
    return %c0_i32, %c0_i32_0 : i32, i32
  }
  func.func @transform_4(%arg0: i32) -> (i32, i32, i32, i32, i32) {
    %c0_i32 = arith.constant 0 : i32
    %c0_i32_0 = arith.constant 0 : i32
    %c0_i32_1 = arith.constant 0 : i32
    %c0_i32_2 = arith.constant 0 : i32
    %c0_i32_3 = arith.constant 0 : i32
    %c0_i32_4 = arith.constant 0 : i32
    return %c0_i32, %c0_i32_0, %c0_i32_1, %c0_i32_2, %c0_i32_3 : i32, i32, i32, i32, i32
  }
  func.func @transform_5(%arg0: i32) -> (i32, i32, i32, i32, i32) {
    %c0_i32 = arith.constant 0 : i32
    %c0_i32_0 = arith.constant 0 : i32
    %c0_i32_1 = arith.constant 0 : i32
    %c0_i32_2 = arith.constant 0 : i32
    %c0_i32_3 = arith.constant 0 : i32
    %c0_i32_4 = arith.constant 0 : i32
    return %c0_i32, %c0_i32_0, %c0_i32_1, %c0_i32_2, %c0_i32_3 : i32, i32, i32, i32, i32
  }
  func.func @transform_6(%arg0: i32) -> (i32, i32, i32, i32) {
    %c0_i32 = arith.constant 0 : i32
    %c0_i32_0 = arith.constant 0 : i32
    %c0_i32_1 = arith.constant 0 : i32
    %c0_i32_2 = arith.constant 0 : i32
    %c0_i32_3 = arith.constant 0 : i32
    return %c0_i32, %c0_i32_0, %c0_i32_1, %c0_i32_2 : i32, i32, i32, i32
  }
  func.func @transform_7(%arg0: i32) -> (i32, i32, i32) {
    %c0_i32 = arith.constant 0 : i32
    %c0_i32_0 = arith.constant 0 : i32
    %c0_i32_1 = arith.constant 0 : i32
    %c0_i32_2 = arith.constant 0 : i32
    return %c0_i32, %c0_i32_0, %c0_i32_1 : i32, i32, i32
  }
  func.func @transform_8(%arg0: i32) -> (i32, i32, i32) {
    %c0_i32 = arith.constant 0 : i32
    %c0_i32_0 = arith.constant 0 : i32
    %c0_i32_1 = arith.constant 0 : i32
    %c0_i32_2 = arith.constant 0 : i32
    return %c0_i32, %c0_i32_0, %c0_i32_1 : i32, i32, i32
  }
  func.func @transform_9(%arg0: i32) -> (i32, i32, i32) {
    %c0_i32 = arith.constant 0 : i32
    %c0_i32_0 = arith.constant 0 : i32
    %c0_i32_1 = arith.constant 0 : i32
    %c0_i32_2 = arith.constant 0 : i32
    return %c0_i32, %c0_i32_0, %c0_i32_1 : i32, i32, i32
  }
  func.func @transform_10(%arg0: i32) -> (i32, i32, i32, i32) {
    %c0_i32 = arith.constant 0 : i32
    %c0_i32_0 = arith.constant 0 : i32
    %c0_i32_1 = arith.constant 0 : i32
    %c0_i32_2 = arith.constant 0 : i32
    %c0_i32_3 = arith.constant 0 : i32
    return %c0_i32, %c0_i32_0, %c0_i32_1, %c0_i32_2 : i32, i32, i32, i32
  }
  func.func @transform_11(%arg0: i32) -> (i32, i32) {
    %c0_i32 = arith.constant 0 : i32
    %c0_i32_0 = arith.constant 0 : i32
    %c0_i32_1 = arith.constant 0 : i32
    return %c0_i32, %c0_i32_0 : i32, i32
  }
  func.func @transform_12(%arg0: i32) -> (i32, i32) {
    %c0_i32 = arith.constant 0 : i32
    %c0_i32_0 = arith.constant 0 : i32
    %c0_i32_1 = arith.constant 0 : i32
    return %c0_i32, %c0_i32_0 : i32, i32
  }
  func.func @transform_13(%arg0: i32) -> (i32, i32) {
    %c0_i32 = arith.constant 0 : i32
    %c0_i32_0 = arith.constant 0 : i32
    %c0_i32_1 = arith.constant 0 : i32
    return %c0_i32, %c0_i32_0 : i32, i32
  }
  func.func @transform_14(%arg0: i32) -> (i32, i32) {
    %c0_i32 = arith.constant 0 : i32
    %c0_i32_0 = arith.constant 0 : i32
    %c0_i32_1 = arith.constant 0 : i32
    return %c0_i32, %c0_i32_0 : i32, i32
  }
  func.func @transform_15(%arg0: i32) -> (i32, i32, i32) {
    %c0_i32 = arith.constant 0 : i32
    %c0_i32_0 = arith.constant 0 : i32
    %c0_i32_1 = arith.constant 0 : i32
    return %arg0, %c0_i32, %c0_i32_0 : i32, i32, i32
  }
}

</mosaic_0001>

<bundles_post_ra>
// kernel: ascc_roberta_forward.1
= control target key start
LH: loop header
LB: loop body
LE: loop exit
PB: predicated region body
PF: predicated region fallthrough
CT: control target
= control target key end

     0   :  { %vm54_vm0 = vcmask 261120   ;;  %v4539_v48 = vmov 0.0   ;;  %vm4540_vm1 = vmmov 0   ;;  %vm368_vm2 = vcmask 130048   ;;  %s5209_s0 = inlined_call_operand.vmem [shape: f32[2,8,32], index: 0, kind: input, shape index: {}]   ;;  %s5210_s4 = inlined_call_operand.vmem [shape: f32[2,3,2,32,16], index: 4, kind: input, shape index: {}]   ;;  %s5211_s2 = inlined_call_operand.vmem [shape: f32[1,32], index: 2, kind: input, shape index: {}]   ;;  %s5212_s3 = inlined_call_operand.vmem [shape: f32[1,32], index: 3, kind: input, shape index: {}]   ;;  %s5213_s5 = inlined_call_operand.vmem [shape: f32[2,3,2,1,16], index: 5, kind: input, shape index: {}]   ;;  %s5214_s1 = inlined_call_operand.vmem [shape: f32[2,1,8], index: 1, kind: input, shape index: {}]   ;;  %s5215_s6 = inlined_call_operand.vmem [shape: f32[2,2,16,32], index: 6, kind: input, shape index: {}]   ;;  %s5216_s10 = inlined_call_operand.vmem [shape: f32[2,6,1,32], index: 10, kind: input, shape index: {}]   ;;  %s5217_s7 = inlined_call_operand.vmem [shape: f32[2,32,64], index: 7, kind: input, shape index: {}]   ;;  %s5218_s8 = inlined_call_operand.vmem [shape: f32[2,64,32], index: 8, kind: input, shape index: {}]   ;;  %s5219_s9 = inlined_call_operand.vmem [shape: f32[2,1,64], index: 9, kind: input, shape index: {}]   ;;  %s5220_s11 = inlined_call_operand.vmem [shape: f32[32,32], index: 11, kind: input, shape index: {}]   ;;  %s5221_s13 = inlined_call_operand.vmem [shape: f32[32,128], index: 13, kind: input, shape index: {}]   ;;  %s5222_s12 = inlined_call_operand.vmem [shape: f32[1,32], index: 12, kind: input, shape index: {}]   ;;  %s5223_s14 = inlined_call_operand.vmem [shape: f32[1,128], index: 14, kind: input, shape index: {}]   ;;  %s5224_s15 = inlined_call_operand.vmem [shape: f32[2,1,128], index: 15, kind: output, shape index: {}]  }
   0x1   :  { %v50_v0 = vld [vmem:[%s5209_s0] sm:$0xff]  ;;  %v51_v1 = vld [vmem:[%s5209_s0 + $0x8] sm:$0xff]  ;;  %v102_v20 = vld [vmem:[%s5210_s4 + $0x10] sm:$0xff]  ;;  %vm537_vm3 = vcmask 64512   ;;  %vm1636_vm4 = vcmask 523264   ;;  %vm3438_vm5 = vcmask 1041409  }
   0x2   :  { %v55_v2 = vsel %vm54_vm0, %v50_v0, 0.0  ;;  %v58_v3 = vsel %vm54_vm0, %v51_v1, 0.0  ;;  %v100_v14 = vld [vmem:[%s5210_s4] sm:$0xff]  ;;  %v101_v15 = vld [vmem:[%s5210_s4 + $0x8] sm:$0xff]  ;;  %v103_v21 = vld [vmem:[%s5210_s4 + $0x18] sm:$0xff] }
   0x3   :  { %56 = vadd.xlane.f32.xlu0 %v55_v2  ;;  %v4297_v16 = vpack.c.bf16 %v101_v15, %v100_v14  ;;  %v3633_v17 = vld [vmem:[%s5210_s4 + $0x40] sm:$0xff]  ;;  %v3634_v18 = vld [vmem:[%s5210_s4 + $0x48] sm:$0xff]  ;;  %v4301_v22 = vpack.c.bf16 %v103_v21, %v102_v20  ;;  %v3635_v23 = vld [vmem:[%s5210_s4 + $0x50] sm:$0xff] }
   0x4   :  { %v4305_v19 = vpack.c.bf16 %v3634_v18, %v3633_v17  ;;  %v3636_v24 = vld [vmem:[%s5210_s4 + $0x58] sm:$0xff]  ;;  %v3641_v26 = vld [vmem:[%s5210_s4 + $0x80] sm:$0xff]  ;;  %v3642_v27 = vld [vmem:[%s5210_s4 + $0x88] sm:$0xff] }
   0x5   :  { %4298 = vmatprep.subr.bf16.mxu0 %v4297_v16  ;;  %v4309_v25 = vpack.c.bf16 %v3636_v24, %v3635_v23  ;;  %v4313_v28 = vpack.c.bf16 %v3642_v27, %v3641_v26  ;;  %v3628_v36 = vld [vmem:[%s5211_s2] ss:$0 sm:$0xff]  ;;  %v3643_v43 = vld [vmem:[%s5210_s4 + $0x90] sm:$0xff]  ;;  %v3644_v44 = vld [vmem:[%s5210_s4 + $0x98] sm:$0xff] }
   0x6   :  { %4300 = vmatpush3.bf16.msra.mxu0 %v4297_v16  ;;  %4306 = vmatprep.subr.bf16.mxu1 %v4305_v19  ;;  %v3629_v38 = vld [vmem:[%s5212_s3] ss:$0 sm:$0xff]  ;;  %v4317_v47 = vpack.c.bf16 %v3644_v44, %v3643_v43  ;;  %v3638_v49 = vld [vmem:[%s5213_s5 + $0x2] ss:$0 sm:$0xff]  ;;  %v3646_v58 = vld [vmem:[%s5213_s5 + $0x4] ss:$0 sm:$0xff] }
   0x7   :  { %59 = vadd.xlane.f32.xlu0 %v58_v3  ;;  %4308 = vmatpush3.bf16.msra.mxu1 %v4305_v19  ;;  %v3630_v54 = vld [vmem:[%s5213_s5] ss:$0 sm:$0xff]  ;;  %v3658_v23 = vld [vmem:[%s5210_s4 + $0x28] sm:$0xff]  ;;  %v3675_v44 = vld [vmem:[%s5210_s4 + $0xb0] sm:$0xff] }
   0x8   :  { %4302 = vmatprep.subr.bf16.mxu0 %v4301_v22  ;;  %4310 = vmatprep.subr.bf16.mxu1 %v4309_v25  ;;  %v3666_v26 = vld [vmem:[%s5210_s4 + $0x68] sm:$0xff] }
   0xa   :  { %4304 = vmatpush3.bf16.msra.mxu0 %v4301_v22  ;;  %v3657_v22 = vld [vmem:[%s5210_s4 + $0x20] sm:$0xff] }
   0xb   :  { %4312 = vmatpush3.bf16.msra.mxu1 %v4309_v25  ;;  %4314 = vmatprep.subr.bf16.mxu0 %v4313_v28  ;;  %v4321_v24 = vpack.c.bf16 %v3658_v23, %v3657_v22  ;;  %v3665_v25 = vld [vmem:[%s5210_s4 + $0x60] sm:$0xff] }
   0xc   :  { %4008 = vmatprep.subr.mxu1 %v4539_v48  ;;  %v4329_v27 = vpack.c.bf16 %v3666_v26, %v3665_v25 }
  0x90   :  { %v57_v4 = vpop.xlane.xlu0 %56 }
  0x91   :  { %v62_v5 = vmul.f32 0.03125, %v57_v4 }
  0x93   :  { %v64_v6 = vsub.f32 %v50_v0, %v62_v5 }
  0x94   :  { %v60_v7 = vpop.xlane.xlu0 %59 }
  0x95   :  { %v63_v8 = vmul.f32 0.03125, %v60_v7  ;;  %v66_v9 = vmul.f32 %v64_v6, %v64_v6 }
  0x97   :  { %v65_v10 = vsub.f32 %v51_v1, %v63_v8  ;;  %v68_v11 = vsel %vm54_vm0, %v66_v9, 0.0  ;;  %v4719_v1 = vld [vmem:[%s5214_s1] ss:$0 sm:$0xff] }
  0x98   :  { %69 = vadd.xlane.f32.xlu1 %v68_v11 }
  0x99   :  { %v67_v12 = vmul.f32 %v65_v10, %v65_v10 }
  0x9b   :  { %v71_v13 = vsel %vm54_vm0, %v67_v12, 0.0 }
  0x9c   :  { %72 = vadd.xlane.f32.xlu1 %v71_v13 }
 0x125   :  { %v70_v29 = vpop.xlane.xlu1 %69 }
 0x126   :  { %v74_v30 = vmul.f32 0.03125, %v70_v29 }
 0x128   :  { %v76_v31 = vadd.f32 1e-05, %v74_v30  ;;  %v3659_v30 = vld [vmem:[%s5210_s4 + $0x30] sm:$0xff] }
 0x129   :  { %v73_v32 = vpop.xlane.xlu1 %72 }
 0x12a   :  { %4477 = vrsqrt.f32 %v76_v31  ;;  %v75_v33 = vmul.f32 0.03125, %v73_v32  ;;  %v3660_v31 = vld [vmem:[%s5210_s4 + $0x38] sm:$0xff] }
 0x12c   :  { %v77_v34 = vadd.f32 1e-05, %v75_v33 }
 0x12e   :  { %4479 = vrsqrt.f32 %v77_v34  ;;  %v4325_v34 = vpack.c.bf16 %v3660_v31, %v3659_v30 }
 0x134   :  { %v4478_v35 = vpop.eup %4477 }
 0x135   :  { %v80_v37 = vmul.f32 %v4478_v35, %v64_v6  ;;  %v4725_v6 = vld [vmem:[%s5214_s1 + $0x1] ss:$0 sm:$0xff]  ;;  %v3667_v35 = vld [vmem:[%s5210_s4 + $0x70] sm:$0xff] }
 0x137   :  { %v88_v39 = vmul.f32 %v3628_v36, %v80_v37  ;;  %v3673_v37 = vld [vmem:[%s5210_s4 + $0xa0] sm:$0xff] }
 0x138   :  { %v4480_v40 = vpop.eup %4479 }
 0x139   :  { %v4669_v41 = vadd.f32 %v3629_v38, %v88_v39  ;;  %v81_v42 = vmul.f32 %v4480_v40, %v65_v10 }
 0x13b   :  { %v89_v45 = vmul.f32 %v3628_v36, %v81_v42  ;;  %3983 = vmatprep.mubr.msk.f32.mxu0 %vm54_vm0, %v4669_v41  ;;  %3994 = vmatprep.mubr.msk.f32.mxu1 %vm54_vm0, %v4669_v41  ;;  %v3668_v36 = vld [vmem:[%s5210_s4 + $0x78] sm:$0xff] }
 0x13c   :  { %v4333_v42 = vpack.c.bf16 %v3668_v36, %v3667_v35  ;;  %v706_v35 = vld [vmem:[%s5215_s6] sm:$0xff]  ;;  %v707_v36 = vld [vmem:[%s5215_s6 + $0x8] sm:$0xff] }
 0x13d   :  { %v4681_v46 = vadd.f32 %v3629_v38, %v89_v45  ;;  %v3674_v38 = vld [vmem:[%s5210_s4 + $0xa8] sm:$0xff]  ;;  %v3676_v45 = vld [vmem:[%s5210_s4 + $0xb8] sm:$0xff] }
 0x13e   :  { %v4337_v43 = vpack.c.bf16 %v3674_v38, %v3673_v37  ;;  %v4349_v37 = vpack.c.bf16 %v707_v36, %v706_v35 }
 0x13f   :  { %3984 = vmatmul.mubr.msk.f32.vlgmr.msra.gmra.mrb[0].mxu0 %vm54_vm0, %v4681_v46  ;;  %3995 = vmatmul.mubr.msk.f32.vlgmr.msra.gmra.mrb[0].mxu1 %vm54_vm0, %v4681_v46 }
 0x140   :  { %4316 = vmatpush3.bf16.msra.mxu0 %v4313_v28  ;;  %4005 = vmatprep.mubr.msk.f32.mxu0 %vm54_vm0, %v4669_v41 }
 0x141   :  { %4318 = vmatprep.subr.bf16.mxu0 %v4317_v47  ;;  %4010 = vmatprep.mubr.msk.f32.mxu1 %vm4540_vm1, %v4539_v48 }
 0x144   :  { %4320 = vmatpush3.bf16.msra.mxu0 %v4317_v47  ;;  %v4341_v47 = vpack.c.bf16 %v3676_v45, %v3675_v44 }
 0x145   :  { %4018 = vmatprep.subr.mxu0 %v4539_v48 }
 0x147   :  { %4006 = vmatmul.mubr.msk.f32.vlgmr.msra.gmra.mrb[2].mxu0 %vm54_vm0, %v4681_v46 }
 0x148   :  { %4020 = vmatprep.mubr.msk.f32.mxu0 %vm4540_vm1, %v4539_v48 }
 0x212   :  { %v3985_v50 = vpop.f32.mrb[0].mxu0  ;;  %v3996_v51 = vpop.f32.mrb[0].mxu1 }
 0x213   :  { %v183_v52 = vpop.f32.mrb[1].mxu0  ;;  %v271_v53 = vpop.f32.mrb[1].mxu1  ;;  %v277_v57 = vadd.f32 %v3996_v51, %v3638_v49  ;;  %v189_v60 = vadd.f32 %v3985_v50, %v3630_v54 }
 0x214   :  { %v272_v55 = vadd.f32 %v3638_v49, %v271_v53  ;;  %v184_v56 = vadd.f32 %v3630_v54, %v183_v52 }
 0x216   :  { %4009 = vmatpush3.xpose.msk.msra.mxu1 %vm368_vm2, %v272_v55  ;;  %v3670_v55 = vld [vmem:[%s5213_s5 + $0x3] ss:$0 sm:$0xff] }
 0x217   :  { %4013 = vmatprep.subr.mxu1 %v4539_v48 }
 0x219   :  { %4011 = vmatmul.mubr.msk.f32.vlgmr.msra.gmra.mrb[2].mxu1 %vm368_vm2, %v184_v56 }
 0x21a   :  { %v4007_v59 = vpop.f32.mrb[2].mxu0  ;;  %4014 = vmatpush3.xpose.msk.msra.mxu1 %vm368_vm2, %v277_v57  ;;  %4015 = vmatprep.mubr.msk.f32.mxu1 %vm4540_vm1, %v4539_v48 }
 0x21b   :  { %v359_v61 = vpop.f32.mrb[3].mxu0  ;;  %4023 = vmatprep.subr.mxu1 %v4539_v48  ;;  %v365_v62 = vadd.f32 %v4007_v59, %v3646_v58 }
 0x21c   :  { %v360_v63 = vadd.f32 %v3646_v58, %v359_v61  ;;  %v3662_v58 = vld [vmem:[%s5213_s5 + $0x1] ss:$0 sm:$0xff] }
 0x21d   :  { %4016 = vmatmul.mubr.msk.f32.vlgmr.msra.gmra.mrb[4].mxu1 %vm368_vm2, %v189_v60  ;;  %v3678_v60 = vld [vmem:[%s5213_s5 + $0x5] ss:$0 sm:$0xff] }
 0x21e   :  { %4019 = vmatpush3.msra.mxu0 %v360_v63  ;;  %4024 = vmatpush3.msra.mxu1 %v365_v62 }
 0x21f   :  { %4025 = vmatprep.mubr.msk.f32.mxu1 %vm4540_vm1, %v4539_v48  ;;  %4322 = vmatprep.subr.bf16.mxu0 %v4321_v24 }
 0x220   :  { %4330 = vmatprep.subr.bf16.mxu1 %v4329_v27 }
 0x2ec   :  { %v441_v0 = vpop.f32.mrb[2].mxu1 }
 0x2ed   :  { %v521_v2 = vmul.f32 0.25, %v441_v0  ;;  %v4012_v3 = vpop.f32.mrb[3].mxu1 }
 0x2ef   :  { %v535_v4 = vadd.f32 %v4719_v1, %v521_v2 }
 0x2f0   :  { %v517_v5 = vpop.f32.mrb[4].mxu1 }
 0x2f1   :  { %v522_v7 = vmul.f32 0.25, %v517_v5  ;;  %v4017_v8 = vpop.f32.mrb[5].mxu1  ;;  %v538_v9 = vsel %vm537_vm3, %v535_v4, -inf }
 0x2f2   :  { %539 = vmax.xlane.f32.xlu1 %v538_v9 }
 0x2f3   :  { %v536_v10 = vadd.f32 %v4725_v6, %v522_v7 }
 0x2f5   :  { %v541_v11 = vsel %vm537_vm3, %v536_v10, -inf }
 0x2f6   :  { %542 = vmax.xlane.f32.xlu0 %v541_v11 }
 0x37f   :  { %v540_v12 = vpop.xlane.xlu1 %539 }
 0x380   :  { %v544_v13 = vsub.f32 %v535_v4, %v540_v12 }
 0x382   :  { %v546_v14 = vmul.f32 1.442695, %v544_v13 }
 0x383   :  { %v543_v15 = vpop.xlane.xlu0 %542 }
 0x384   :  { %4481 = vpow2.f32 %v546_v14  ;;  %v545_v16 = vsub.f32 %v536_v10, %v543_v15 }
 0x386   :  { %v548_v17 = vmul.f32 1.442695, %v545_v16 }
 0x388   :  { %4483 = vpow2.f32 %v548_v17 }
 0x38e   :  { %v4482_v18 = vpop.eup %4481 }
 0x38f   :  { %v550_v19 = vsel %vm537_vm3, %v4482_v18, 0.0 }
 0x390   :  { %551 = vadd.xlane.f32.xlu1 %v550_v19 }
 0x392   :  { %v4484_v20 = vpop.eup %4483 }
 0x393   :  { %v553_v21 = vsel %vm537_vm3, %v4484_v20, 0.0 }
 0x394   :  { %554 = vadd.xlane.f32.xlu0 %v553_v21 }
 0x41d   :  { %v552_v28 = vpop.xlane.xlu1 %551 }
 0x41e   :  { %4485 = vrcp.f32 %v552_v28 }
 0x421   :  { %v555_v29 = vpop.xlane.xlu0 %554 }
 0x422   :  { %4487 = vrcp.f32 %v555_v29 }
 0x428   :  { %v4486_v32 = vpop.eup %4485 }
 0x429   :  { %v558_v33 = vmul.f32 %v4486_v32, %v4482_v18  ;;  %v3687_v32 = vld [vmem:[%s5215_s6 + $0x10] sm:$0xff] }
 0x42b   :  { %4021 = vmatmul.mubr.msk.f32.vlgmr.msra.gmra.mrb[4].mxu0 %vm537_vm3, %v558_v33  ;;  %v3688_v33 = vld [vmem:[%s5215_s6 + $0x18] sm:$0xff] }
 0x42c   :  { %v4488_v39 = vpop.eup %4487  ;;  %4324 = vmatpush3.bf16.msra.mxu0 %v4321_v24  ;;  %4036 = vmatprep.mubr.msk.f32.mxu0 %vm54_vm0, %v4669_v41 }
 0x42d   :  { %v559_v40 = vmul.f32 %v4488_v39, %v4484_v20  ;;  %4326 = vmatprep.subr.bf16.mxu0 %v4325_v34 }
 0x42f   :  { %4026 = vmatmul.mubr.msk.f32.vlgmr.msra.gmra.mrb[6].mxu1 %vm537_vm3, %v559_v40 }
 0x430   :  { %4328 = vmatpush3.bf16.msra.mxu0 %v4325_v34  ;;  %4332 = vmatpush3.bf16.msra.mxu1 %v4329_v27  ;;  %v4345_v34 = vpack.c.bf16 %v3688_v33, %v3687_v32  ;;  %v1627_v32 = vld [vmem:[%s5218_s8 + $0x38] sm:$0xff] }
 0x431   :  { %4047 = vmatprep.mubr.msk.f32.mxu1 %vm54_vm0, %v4669_v41  ;;  %4334 = vmatprep.subr.bf16.mxu1 %v4333_v42 }
 0x432   :  { %4338 = vmatprep.subr.bf16.mxu0 %v4337_v43 }
 0x433   :  { %4037 = vmatmul.mubr.msk.f32.vlgmr.msra.gmra.mrb[6].mxu0 %vm54_vm0, %v4681_v46 }
 0x434   :  { %4336 = vmatpush3.bf16.msra.mxu1 %v4333_v42  ;;  %4340 = vmatpush3.bf16.msra.mxu0 %v4337_v43  ;;  %v3693_v43 = vld [vmem:[%s5216_s10] ss:$0 sm:$0xff] }
 0x435   :  { %4058 = vmatprep.mubr.msk.f32.mxu0 %vm54_vm0, %v4669_v41  ;;  %4342 = vmatprep.subr.bf16.mxu0 %v4341_v47 }
 0x436   :  { %4061 = vmatprep.subr.mxu1 %v4539_v48 }
 0x437   :  { %4048 = vmatmul.mubr.msk.f32.vlgmr.msra.gmra.mrb[8].mxu1 %vm54_vm0, %v4681_v46 }
 0x438   :  { %4344 = vmatpush3.bf16.msra.mxu0 %v4341_v47  ;;  %4063 = vmatprep.mubr.msk.f32.mxu1 %vm4540_vm1, %v4539_v48 }
 0x439   :  { %4071 = vmatprep.subr.mxu0 %v4539_v48 }
 0x43b   :  { %4059 = vmatmul.mubr.msk.f32.vlgmr.msra.gmra.mrb[8].mxu0 %vm54_vm0, %v4681_v46 }
 0x43c   :  { %4073 = vmatprep.mubr.msk.f32.mxu0 %vm4540_vm1, %v4539_v48 }
 0x4fe   :  { %v4788_v49 = vpop.f32.mrb[4].mxu0 }
 0x4ff   :  { %v4022_v50 = vpop.f32.mrb[5].mxu0 }
 0x502   :  { %v4790_v51 = vpop.f32.mrb[6].mxu1 }
 0x503   :  { %v4027_v52 = vpop.f32.mrb[7].mxu1 }
 0x506   :  { %v4038_v53 = vpop.f32.mrb[6].mxu0 }
 0x507   :  { %v787_v54 = vpop.f32.mrb[7].mxu0  ;;  %v793_v3 = vadd.f32 %v4038_v53, %v3662_v58 }
 0x508   :  { %v788_v62 = vadd.f32 %v3662_v58, %v787_v54 }
 0x50a   :  { %v4049_v56 = vpop.f32.mrb[8].mxu1 }
 0x50b   :  { %v875_v57 = vpop.f32.mrb[9].mxu1  ;;  %v881_v0 = vadd.f32 %v4049_v56, %v3670_v55 }
 0x50c   :  { %v876_v59 = vadd.f32 %v3670_v55, %v875_v57 }
 0x50e   :  { %v4060_v61 = vpop.f32.mrb[8].mxu0  ;;  %4062 = vmatpush3.xpose.msk.msra.mxu1 %vm368_vm2, %v876_v59 }
 0x50f   :  { %v963_v63 = vpop.f32.mrb[9].mxu0  ;;  %4066 = vmatprep.subr.mxu1 %v4539_v48  ;;  %v969_v4 = vadd.f32 %v4060_v61, %v3678_v60 }
 0x510   :  { %v964_v2 = vadd.f32 %v3678_v60, %v963_v63  ;;  %v1519_v63 = vld [vmem:[%s5217_s7 + $0x8] sm:$0xff] }
 0x511   :  { %4064 = vmatmul.mubr.msk.f32.vlgmr.msra.gmra.mrb[10].mxu1 %vm368_vm2, %v788_v62 }
 0x512   :  { %4067 = vmatpush3.xpose.msk.msra.mxu1 %vm368_vm2, %v881_v0  ;;  %4072 = vmatpush3.msra.mxu0 %v964_v2  ;;  %v1520_v2 = vld [vmem:[%s5217_s7 + $0x10] sm:$0xff] }
 0x513   :  { %4068 = vmatprep.mubr.msk.f32.mxu1 %vm4540_vm1, %v4539_v48  ;;  %4076 = vmatprep.subr.mxu1 %v4539_v48 }
 0x514   :  { %4346 = vmatprep.subr.bf16.mxu0 %v4345_v34 }
 0x515   :  { %4069 = vmatmul.mubr.msk.f32.vlgmr.msra.gmra.mrb[12].mxu1 %vm368_vm2, %v793_v3  ;;  %v1521_v3 = vld [vmem:[%s5217_s7 + $0x18] sm:$0xff] }
 0x516   :  { %4077 = vmatpush3.msra.mxu1 %v969_v4  ;;  %4078 = vmatprep.mubr.msk.f32.mxu1 %vm4540_vm1, %v4539_v48  ;;  %v4357_v4 = vpack.c.bf16 %v1521_v3, %v1520_v2 }
 0x5e4   :  { %v1044_v5 = vpop.f32.mrb[10].mxu1 }
 0x5e5   :  { %v1124_v7 = vmul.f32 0.25, %v1044_v5  ;;  %v4065_v8 = vpop.f32.mrb[11].mxu1 }
 0x5e7   :  { %v1126_v9 = vadd.f32 %v4719_v1, %v1124_v7 }
 0x5e8   :  { %v1120_v10 = vpop.f32.mrb[12].mxu1 }
 0x5e9   :  { %v1125_v11 = vmul.f32 0.25, %v1120_v10  ;;  %v4070_v12 = vpop.f32.mrb[13].mxu1  ;;  %v1128_v13 = vsel %vm537_vm3, %v1126_v9, -inf }
 0x5ea   :  { %1129 = vmax.xlane.f32.xlu0 %v1128_v13  ;;  %v3696_v13 = vld [vmem:[%s5216_s10 + $0x1] ss:$0 sm:$0xff] }
 0x5eb   :  { %v1127_v14 = vadd.f32 %v4725_v6, %v1125_v11 }
 0x5ed   :  { %v1131_v15 = vsel %vm537_vm3, %v1127_v14, -inf }
 0x5ee   :  { %1132 = vmax.xlane.f32.xlu1 %v1131_v15 }
 0x677   :  { %v1130_v16 = vpop.xlane.xlu0 %1129 }
 0x678   :  { %v1134_v17 = vsub.f32 %v1126_v9, %v1130_v16 }
 0x67a   :  { %v1136_v18 = vmul.f32 1.442695, %v1134_v17  ;;  %v3697_v17 = vld [vmem:[%s5216_s10 + $0x2] ss:$0 sm:$0xff] }
 0x67b   :  { %v1133_v19 = vpop.xlane.xlu1 %1132 }
 0x67c   :  { %4489 = vpow2.f32 %v1136_v18  ;;  %v1135_v20 = vsub.f32 %v1127_v14, %v1133_v19 }
 0x67e   :  { %v1138_v21 = vmul.f32 1.442695, %v1135_v20 }
 0x680   :  { %4491 = vpow2.f32 %v1138_v21 }
 0x686   :  { %v4490_v22 = vpop.eup %4489 }
 0x687   :  { %v1140_v23 = vsel %vm537_vm3, %v4490_v22, 0.0 }
 0x688   :  { %1141 = vadd.xlane.f32.xlu0 %v1140_v23  ;;  %v1621_v23 = vld [vmem:[%s5218_s8 + $0x8] sm:$0xff] }
 0x68a   :  { %v4492_v24 = vpop.eup %4491 }
 0x68b   :  { %v1143_v25 = vsel %vm537_vm3, %v4492_v24, 0.0 }
 0x68c   :  { %1144 = vadd.xlane.f32.xlu1 %v1143_v25  ;;  %v1622_v25 = vld [vmem:[%s5218_s8 + $0x10] sm:$0xff] }
 0x715   :  { %v1142_v26 = vpop.xlane.xlu0 %1141 }
 0x716   :  { %4493 = vrcp.f32 %v1142_v26  ;;  %v1623_v26 = vld [vmem:[%s5218_s8 + $0x18] sm:$0xff] }
 0x719   :  { %v1145_v27 = vpop.xlane.xlu1 %1144 }
 0x71a   :  { %4495 = vrcp.f32 %v1145_v27  ;;  %v4365_v27 = vpack.c.bf16 %v1623_v26, %v1622_v25 }
 0x720   :  { %v4494_v28 = vpop.eup %4493 }
 0x721   :  { %v1148_v29 = vmul.f32 %v4494_v28, %v4490_v22  ;;  %v1620_v22 = vld [vmem:[%s5218_s8] sm:$0xff] }
 0x722   :  { %v1624_v28 = vld [vmem:[%s5218_s8 + $0x20] sm:$0xff] }
 0x723   :  { %4074 = vmatmul.mubr.msk.f32.vlgmr.msra.gmra.mrb[10].mxu0 %vm537_vm3, %v1148_v29  ;;  %v1625_v29 = vld [vmem:[%s5218_s8 + $0x28] sm:$0xff] }
 0x724   :  { %v4496_v30 = vpop.eup %4495  ;;  %4348 = vmatpush3.bf16.msra.mxu0 %v4345_v34  ;;  %v3698_v34 = vld [vmem:[%s5219_s9] ss:$0 sm:$0xff] }
 0x725   :  { %v1149_v31 = vmul.f32 %v4496_v30, %v4492_v24  ;;  %4350 = vmatprep.subr.bf16.mxu0 %v4349_v37  ;;  %v4361_v24 = vpack.c.bf16 %v1621_v23, %v1620_v22  ;;  %v4369_v30 = vpack.c.bf16 %v1625_v29, %v1624_v28  ;;  %v3707_v29 = vld [vmem:[%s5216_s10 + $0x4] ss:$0 sm:$0xff] }
 0x727   :  { %4079 = vmatmul.mubr.msk.f32.vlgmr.msra.gmra.mrb[14].mxu1 %vm537_vm3, %v1149_v31  ;;  %v1626_v31 = vld [vmem:[%s5218_s8 + $0x30] sm:$0xff] }
 0x728   :  { %v4373_v33 = vpack.c.bf16 %v1627_v32, %v1626_v31 }
 0x7f6   :  { %v1219_v38 = vpop.f32.mrb[10].mxu0 }
 0x7f7   :  { %v4075_v39 = vpop.f32.mrb[11].mxu0  ;;  %4085 = vmatprep.mubr.msk.f32.mxu0 %vm368_vm2, %v1219_v38 }
 0x7fa   :  { %v1292_v40 = vpop.f32.mrb[14].mxu1 }
 0x7fb   :  { %v4080_v42 = vpop.f32.mrb[15].mxu1  ;;  %4086 = vmatmul.mubr.msk.f32.vlgmr.msra.gmra.mrb[12].mxu0 %vm368_vm2, %v1292_v40 }
 0x7fc   :  { %4352 = vmatpush3.bf16.msra.mxu0 %v4349_v37  ;;  %4092 = vmatprep.mubr.msk.f32.mxu0 %vm368_vm2, %v4788_v49 }
 0x7fd   :  { %4362 = vmatprep.subr.bf16.mxu0 %v4361_v24 }
 0x803   :  { %4093 = vmatmul.mubr.msk.f32.vlgmr.msra.gmra.mrb[12].mxu0 %vm368_vm2, %v4790_v51 }
 0x804   :  { %4364 = vmatpush3.bf16.msra.mxu0 %v4361_v24 }
 0x805   :  { %4366 = vmatprep.subr.bf16.mxu0 %v4365_v27 }
 0x808   :  { %4368 = vmatpush3.bf16.msra.mxu0 %v4365_v27 }
 0x809   :  { %4370 = vmatprep.subr.bf16.mxu0 %v4369_v30 }
 0x80c   :  { %4372 = vmatpush3.bf16.msra.mxu0 %v4369_v30 }
 0x80d   :  { %4374 = vmatprep.subr.bf16.mxu0 %v4373_v33 }
 0x810   :  { %4376 = vmatpush3.bf16.msra.mxu0 %v4373_v33  ;;  %v3708_v33 = vld [vmem:[%s5216_s10 + $0x5] ss:$0 sm:$0xff] }
 0x8d6   :  { %v4094_v44 = vpop.f32.mrb[12].mxu0 }
 0x8d7   :  { %v1469_v45 = vadd.f32 %v4094_v44, %v3693_v43  ;;  %v1452_v47 = vpop.f32.mrb[13].mxu0 }
 0x8d8   :  { %v1468_v50 = vadd.f32 %v3693_v43, %v1452_v47 }
 0x8d9   :  { %v1471_v52 = vadd.f32 %v1469_v45, %v4681_v46 }
 0x8da   :  { %v1470_v53 = vadd.f32 %v1468_v50, %v4669_v41  ;;  %v1518_v41 = vld [vmem:[%s5217_s7] sm:$0xff] }
 0x8db   :  { %v1479_v54 = vsel %vm54_vm0, %v1471_v52, 0.0  ;;  %v4353_v0 = vpack.c.bf16 %v1519_v63, %v1518_v41 }
 0x8dc   :  { %1480 = vadd.xlane.f32.xlu1 %v1479_v54  ;;  %v1476_v49 = vsel %vm54_vm0, %v1470_v53, 0.0  ;;  %v3702_v54 = vld [vmem:[%s5216_s10 + $0x3] ss:$0 sm:$0xff] }
 0x8dd   :  { %1477 = vadd.xlane.f32.xlu0 %v1476_v49  ;;  %4354 = vmatprep.subr.bf16.mxu1 %v4353_v0 }
 0x8de   :  { %4356 = vmatpush3.bf16.msra.mxu1 %v4353_v0 }
 0x8df   :  { %4358 = vmatprep.subr.bf16.mxu1 %v4357_v4 }
 0x8e2   :  { %4360 = vmatpush3.bf16.msra.mxu1 %v4357_v4 }
 0x969   :  { %v1481_v55 = vpop.xlane.xlu1 %1480 }
 0x96a   :  { %v1483_v51 = vmul.f32 0.03125, %v1481_v55  ;;  %v1478_v56 = vpop.xlane.xlu0 %1477 }
 0x96b   :  { %v1482_v57 = vmul.f32 0.03125, %v1478_v56 }
 0x96c   :  { %v1485_v58 = vsub.f32 %v1471_v52, %v1483_v51 }
 0x96d   :  { %v1484_v59 = vsub.f32 %v1470_v53, %v1482_v57 }
 0x96e   :  { %v1487_v60 = vmul.f32 %v1485_v58, %v1485_v58 }
 0x96f   :  { %v1486_v61 = vmul.f32 %v1484_v59, %v1484_v59 }
 0x970   :  { %v1491_v62 = vsel %vm54_vm0, %v1487_v60, 0.0 }
 0x971   :  { %1492 = vadd.xlane.f32.xlu1 %v1491_v62  ;;  %v1488_v46 = vsel %vm54_vm0, %v1486_v61, 0.0 }
 0x972   :  { %1489 = vadd.xlane.f32.xlu0 %v1488_v46 }
 0x9fe   :  { %v1493_v5 = vpop.xlane.xlu1 %1492 }
 0x9ff   :  { %v1495_v7 = vmul.f32 0.03125, %v1493_v5  ;;  %v1490_v8 = vpop.xlane.xlu0 %1489 }
 0xa00   :  { %v1494_v9 = vmul.f32 0.03125, %v1490_v8  ;;  %v3710_v8 = vld [vmem:[%s5210_s4 + $0xc8] sm:$0xff] }
 0xa01   :  { %v1497_v10 = vadd.f32 1e-05, %v1495_v7  ;;  %v3709_v7 = vld [vmem:[%s5210_s4 + $0xc0] sm:$0xff] }
 0xa02   :  { %v1496_v11 = vadd.f32 1e-05, %v1494_v9  ;;  %v4377_v9 = vpack.c.bf16 %v3710_v8, %v3709_v7 }
 0xa03   :  { %4497 = vrsqrt.f32 %v1497_v10  ;;  %v3725_v10 = vld [vmem:[%s5210_s4 + $0x140] sm:$0xff] }
 0xa04   :  { %4499 = vrsqrt.f32 %v1496_v11  ;;  %v3726_v11 = vld [vmem:[%s5210_s4 + $0x148] sm:$0xff]  ;;  %4378 = vmatprep.subr.bf16.mxu1 %v4377_v9 }
 0xa0d   :  { %v4498_v12 = vpop.eup %4497 }
 0xa0e   :  { %v4500_v14 = vpop.eup %4499  ;;  %v1501_v15 = vmul.f32 %v4498_v12, %v1485_v58  ;;  %v4393_v12 = vpack.c.bf16 %v3726_v11, %v3725_v10 }
 0xa0f   :  { %v1500_v16 = vmul.f32 %v4500_v14, %v1484_v59  ;;  %v3712_v14 = vld [vmem:[%s5210_s4 + $0xd8] sm:$0xff] }
 0xa10   :  { %v1509_v18 = vmul.f32 %v3696_v13, %v1501_v15  ;;  %4394 = vmatprep.subr.bf16.mxu0 %v4393_v12 }
 0xa11   :  { %v1508_v19 = vmul.f32 %v3696_v13, %v1500_v16  ;;  %v3711_v13 = vld [vmem:[%s5210_s4 + $0xd0] sm:$0xff] }
 0xa12   :  { %v1517_v21 = vadd.f32 %v3697_v17, %v1509_v18  ;;  %v4381_v15 = vpack.c.bf16 %v3712_v14, %v3711_v13  ;;  %v3727_v16 = vld [vmem:[%s5210_s4 + $0x150] sm:$0xff] }
 0xa13   :  { %v1516_v20 = vadd.f32 %v3697_v17, %v1508_v19  ;;  %v3728_v17 = vld [vmem:[%s5210_s4 + $0x158] sm:$0xff]  ;;  %v3717_v19 = vld [vmem:[%s5210_s4 + $0x100] sm:$0xff] }
 0xa14   :  { %v4397_v18 = vpack.c.bf16 %v3728_v17, %v3727_v16  ;;  %v3742_v16 = vld [vmem:[%s5210_s4 + $0xe8] sm:$0xff] }
 0xa15   :  { %4103 = vmatprep.mubr.msk.f32.mxu1 %vm54_vm0, %v1516_v20 }
 0xa16   :  { %4104 = vmatmul.mubr.msk.f32.vlgmr.msra.gmra.mrb[16].mxu1 %vm54_vm0, %v1517_v21 }
 0xa17   :  { %4380 = vmatpush3.bf16.msra.mxu1 %v4377_v9 }
 0xa18   :  { %4382 = vmatprep.subr.bf16.mxu1 %v4381_v15 }
 0xa1b   :  { %4384 = vmatpush3.bf16.msra.mxu1 %v4381_v15  ;;  %v3741_v15 = vld [vmem:[%s5210_s4 + $0xe0] sm:$0xff] }
 0xa1c   :  { %v4401_v17 = vpack.c.bf16 %v3742_v16, %v3741_v15 }
 0xae9   :  { %v4105_v35 = vpop.f32.mrb[16].mxu1 }
 0xaea   :  { %v1607_v36 = vadd.f32 %v4105_v35, %v3698_v34  ;;  %v1601_v37 = vpop.f32.mrb[17].mxu1 }
 0xaeb   :  { %v1602_v38 = vadd.f32 %v3698_v34, %v1601_v37  ;;  %v3720_v37 = vld [vmem:[%s5210_s4 + $0x118] sm:$0xff] }
 0xaec   :  { %v1613_v39 = vmul.f32 0.70710677, %v1607_v36  ;;  %v1611_v50 = vmul.f32 0.5, %v1607_v36  ;;  %v3719_v36 = vld [vmem:[%s5210_s4 + $0x110] sm:$0xff] }
 0xaed   :  { %v1612_v40 = vmul.f32 0.70710677, %v1602_v38  ;;  %v1610_v45 = vmul.f32 0.5, %v1602_v38 }
 0xaee   :  { %4501 = verf.f32 %v1613_v39 }
 0xaef   :  { %4503 = verf.f32 %v1612_v40  ;;  %v4389_v40 = vpack.c.bf16 %v3720_v37, %v3719_v36  ;;  %v3759_v36 = vld [vmem:[%s5210_s4 + $0x170] sm:$0xff]  ;;  %v3760_v37 = vld [vmem:[%s5210_s4 + $0x178] sm:$0xff] }
 0xaf8   :  { %v4502_v42 = vpop.eup %4501 }
 0xaf9   :  { %v4504_v43 = vpop.eup %4503  ;;  %v1617_v44 = vadd.f32 1.0, %v4502_v42  ;;  %v3730_v42 = vld [vmem:[%s5213_s5 + $0xa] ss:$0 sm:$0xff] }
 0xafa   :  { %v1616_v47 = vadd.f32 1.0, %v4504_v43 }
 0xafb   :  { %v1619_v53 = vmul.f32 %v1617_v44, %v1611_v50 }
 0xafc   :  { %v1618_v52 = vmul.f32 %v1616_v47, %v1610_v45 }
 0xafe   :  { %4122 = vmatprep.mubr.msk.f32.mxu0 %vm1636_vm4, %v1618_v52  ;;  %v3722_v52 = vld [vmem:[%s5213_s5 + $0x8] ss:$0 sm:$0xff] }
 0xaff   :  { %4123 = vmatmul.mubr.msk.f32.vlgmr.msra.gmra.mrb[14].mxu0 %vm1636_vm4, %v1619_v53 }
 0xb00   :  { %4396 = vmatpush3.bf16.msra.mxu0 %v4393_v12 }
 0xb01   :  { %4398 = vmatprep.subr.bf16.mxu0 %v4397_v18 }
 0xb04   :  { %4400 = vmatpush3.bf16.msra.mxu0 %v4397_v18  ;;  %v3749_v18 = vld [vmem:[%s5210_s4 + $0x120] sm:$0xff] }
 0xb05   :  { %4168 = vmatprep.subr.mxu0 %v4539_v48 }
 0xbd2   :  { %v4124_v49 = vpop.f32.mrb[14].mxu0 }
 0xbd3   :  { %v1715_v55 = vadd.f32 %v4124_v49, %v3702_v54  ;;  %v1709_v51 = vpop.f32.mrb[15].mxu0  ;;  %v3714_v49 = vld [vmem:[%s5213_s5 + $0x6] ss:$0 sm:$0xff] }
 0xbd4   :  { %v1710_v56 = vadd.f32 %v3702_v54, %v1709_v51 }
 0xbd5   :  { %v1719_v57 = vadd.f32 %v1715_v55, %v1517_v21 }
 0xbd6   :  { %v1718_v58 = vadd.f32 %v1710_v56, %v1516_v20  ;;  %v3718_v20 = vld [vmem:[%s5210_s4 + $0x108] sm:$0xff] }
 0xbd7   :  { %v1727_v59 = vsel %vm54_vm0, %v1719_v57, 0.0  ;;  %v4385_v21 = vpack.c.bf16 %v3718_v20, %v3717_v19  ;;  %v3750_v19 = vld [vmem:[%s5210_s4 + $0x128] sm:$0xff] }
 0xbd8   :  { %1728 = vadd.xlane.f32.xlu1 %v1727_v59  ;;  %v1724_v60 = vsel %vm54_vm0, %v1718_v58, 0.0  ;;  %v4409_v20 = vpack.c.bf16 %v3750_v19, %v3749_v18 }
 0xbd9   :  { %1725 = vadd.xlane.f32.xlu0 %v1724_v60  ;;  %4386 = vmatprep.subr.bf16.mxu1 %v4385_v21 }
 0xc65   :  { %v1729_v61 = vpop.xlane.xlu1 %1728 }
 0xc66   :  { %v1731_v62 = vmul.f32 0.03125, %v1729_v61  ;;  %v1726_v46 = vpop.xlane.xlu0 %1725 }
 0xc67   :  { %v1730_v41 = vmul.f32 0.03125, %v1726_v46 }
 0xc68   :  { %v1733_v63 = vsub.f32 %v1719_v57, %v1731_v62 }
 0xc69   :  { %v1732_v0 = vsub.f32 %v1718_v58, %v1730_v41 }
 0xc6a   :  { %v1735_v2 = vmul.f32 %v1733_v63, %v1733_v63 }
 0xc6b   :  { %v1734_v3 = vmul.f32 %v1732_v0, %v1732_v0 }
 0xc6c   :  { %v1739_v4 = vsel %vm54_vm0, %v1735_v2, 0.0 }
 0xc6d   :  { %1740 = vadd.xlane.f32.xlu1 %v1739_v4  ;;  %v1736_v5 = vsel %vm54_vm0, %v1734_v3, 0.0 }
 0xc6e   :  { %1737 = vadd.xlane.f32.xlu0 %v1736_v5 }
 0xcfa   :  { %v1741_v22 = vpop.xlane.xlu1 %1740 }
 0xcfb   :  { %v1743_v23 = vmul.f32 0.03125, %v1741_v22  ;;  %v1738_v24 = vpop.xlane.xlu0 %1737 }
 0xcfc   :  { %v1742_v25 = vmul.f32 0.03125, %v1738_v24  ;;  %v3744_v24 = vld [vmem:[%s5210_s4 + $0xf8] sm:$0xff] }
 0xcfd   :  { %v1745_v26 = vadd.f32 1e-05, %v1743_v23  ;;  %v3743_v23 = vld [vmem:[%s5210_s4 + $0xf0] sm:$0xff] }
 0xcfe   :  { %v1744_v27 = vadd.f32 1e-05, %v1742_v25 }
 0xcff   :  { %4505 = vrsqrt.f32 %v1745_v26 }
 0xd00   :  { %4507 = vrsqrt.f32 %v1744_v27  ;;  %v4405_v27 = vpack.c.bf16 %v3744_v24, %v3743_v23  ;;  %v3771_v23 = vld [vmem:[%s5215_s6 + $0x30] sm:$0xff]  ;;  %v3772_v24 = vld [vmem:[%s5215_s6 + $0x38] sm:$0xff] }
 0xd09   :  { %v4506_v28 = vpop.eup %4505 }
 0xd0a   :  { %v4508_v30 = vpop.eup %4507  ;;  %v1749_v31 = vmul.f32 %v4506_v28, %v1733_v63  ;;  %v3751_v28 = vld [vmem:[%s5210_s4 + $0x130] sm:$0xff] }
 0xd0b   :  { %v1748_v32 = vmul.f32 %v4508_v30, %v1732_v0  ;;  %v3757_v30 = vld [vmem:[%s5210_s4 + $0x160] sm:$0xff] }
 0xd0c   :  { %v1757_v34 = vmul.f32 %v3707_v29, %v1749_v31  ;;  %v3758_v31 = vld [vmem:[%s5210_s4 + $0x168] sm:$0xff] }
 0xd0d   :  { %v1756_v35 = vmul.f32 %v3707_v29, %v1748_v32  ;;  %v3752_v29 = vld [vmem:[%s5210_s4 + $0x138] sm:$0xff] }
 0xd0e   :  { %v4947_v39 = vadd.f32 %v3708_v33, %v1757_v34  ;;  %v4413_v34 = vpack.c.bf16 %v3752_v29, %v3751_v28 }
 0xd0f   :  { %v4945_v38 = vadd.f32 %v3708_v33, %v1756_v35  ;;  %v4417_v35 = vpack.c.bf16 %v3758_v31, %v3757_v30 }
 0xd11   :  { %4133 = vmatprep.mubr.msk.f32.mxu1 %vm54_vm0, %v4945_v38  ;;  %4155 = vmatprep.mubr.msk.f32.mxu0 %vm54_vm0, %v4945_v38 }
 0xd12   :  { %4134 = vmatmul.mubr.msk.f32.vlgmr.msra.gmra.mrb[18].mxu1 %vm54_vm0, %v4947_v39  ;;  %4156 = vmatmul.mubr.msk.f32.vlgmr.msra.gmra.mrb[16].mxu0 %vm54_vm0, %v4947_v39 }
 0xd13   :  { %4388 = vmatpush3.bf16.msra.mxu1 %v4385_v21  ;;  %4144 = vmatprep.mubr.msk.f32.mxu1 %vm54_vm0, %v4945_v38 }
 0xd14   :  { %4390 = vmatprep.subr.bf16.mxu1 %v4389_v40  ;;  %4170 = vmatprep.mubr.msk.f32.mxu0 %vm4540_vm1, %v4539_v48 }
 0xd17   :  { %4392 = vmatpush3.bf16.msra.mxu1 %v4389_v40  ;;  %v4421_v40 = vpack.c.bf16 %v3760_v37, %v3759_v36 }
 0xd18   :  { %4158 = vmatprep.subr.mxu1 %v4539_v48 }
 0xd1a   :  { %4145 = vmatmul.mubr.msk.f32.vlgmr.msra.gmra.mrb[20].mxu1 %vm54_vm0, %v4947_v39 }
 0xd1b   :  { %4160 = vmatprep.mubr.msk.f32.mxu1 %vm4540_vm1, %v4539_v48 }
 0xde5   :  { %v4135_v43 = vpop.f32.mrb[18].mxu1  ;;  %v4157_v44 = vpop.f32.mrb[16].mxu0 }
 0xde6   :  { %v1851_v45 = vpop.f32.mrb[19].mxu1  ;;  %v2027_v47 = vpop.f32.mrb[17].mxu0  ;;  %v1857_v57 = vadd.f32 %v4135_v43, %v3714_v49  ;;  %v2033_v58 = vadd.f32 %v4157_v44, %v3730_v42 }
 0xde7   :  { %v2028_v50 = vadd.f32 %v3730_v42, %v2027_v47  ;;  %v1852_v51 = vadd.f32 %v3714_v49, %v1851_v45  ;;  %v3746_v49 = vld [vmem:[%s5213_s5 + $0x7] ss:$0 sm:$0xff] }
 0xde9   :  { %4169 = vmatpush3.msra.mxu0 %v2028_v50 }
 0xdea   :  { %4402 = vmatprep.subr.bf16.mxu0 %v4401_v17 }
 0xded   :  { %v4146_v53 = vpop.f32.mrb[20].mxu1 }
 0xdee   :  { %v1939_v54 = vpop.f32.mrb[21].mxu1  ;;  %v1945_v56 = vadd.f32 %v4146_v53, %v3722_v52 }
 0xdef   :  { %v1940_v55 = vadd.f32 %v3722_v52, %v1939_v54  ;;  %v3754_v52 = vld [vmem:[%s5213_s5 + $0x9] ss:$0 sm:$0xff] }
 0xdf1   :  { %4159 = vmatpush3.xpose.msk.msra.mxu1 %vm368_vm2, %v1940_v55 }
 0xdf2   :  { %4163 = vmatprep.subr.mxu1 %v4539_v48 }
 0xdf4   :  { %4161 = vmatmul.mubr.msk.f32.vlgmr.msra.gmra.mrb[22].mxu1 %vm368_vm2, %v1852_v51  ;;  %v3762_v51 = vld [vmem:[%s5213_s5 + $0xb] ss:$0 sm:$0xff] }
 0xdf5   :  { %4164 = vmatpush3.xpose.msk.msra.mxu1 %vm368_vm2, %v1945_v56  ;;  %4165 = vmatprep.mubr.msk.f32.mxu1 %vm4540_vm1, %v4539_v48 }
 0xdf6   :  { %4173 = vmatprep.subr.mxu1 %v4539_v48 }
 0xdf8   :  { %4166 = vmatmul.mubr.msk.f32.vlgmr.msra.gmra.mrb[24].mxu1 %vm368_vm2, %v1857_v57 }
 0xdf9   :  { %4174 = vmatpush3.msra.mxu1 %v2033_v58  ;;  %4175 = vmatprep.mubr.msk.f32.mxu1 %vm4540_vm1, %v4539_v48 }
 0xdfa   :  { %4410 = vmatprep.subr.bf16.mxu1 %v4409_v20 }
 0xec7   :  { %v2108_v59 = vpop.f32.mrb[22].mxu1 }
 0xec8   :  { %v2188_v60 = vmul.f32 0.25, %v2108_v59  ;;  %v4162_v61 = vpop.f32.mrb[23].mxu1 }
 0xeca   :  { %v2190_v62 = vadd.f32 %v4719_v1, %v2188_v60 }
 0xecb   :  { %v2184_v46 = vpop.f32.mrb[24].mxu1 }
 0xecc   :  { %v2189_v41 = vmul.f32 0.25, %v2184_v46  ;;  %v4167_v63 = vpop.f32.mrb[25].mxu1  ;;  %v2192_v0 = vsel %vm537_vm3, %v2190_v62, -inf }
 0xecd   :  { %2193 = vmax.xlane.f32.xlu1 %v2192_v0 }
 0xece   :  { %v2191_v2 = vadd.f32 %v4725_v6, %v2189_v41 }
 0xed0   :  { %v2195_v3 = vsel %vm537_vm3, %v2191_v2, -inf }
 0xed1   :  { %2196 = vmax.xlane.f32.xlu0 %v2195_v3 }
 0xf5a   :  { %v2194_v4 = vpop.xlane.xlu1 %2193 }
 0xf5b   :  { %v2198_v5 = vsub.f32 %v2190_v62, %v2194_v4 }
 0xf5d   :  { %v2200_v7 = vmul.f32 1.442695, %v2198_v5 }
 0xf5e   :  { %v2197_v8 = vpop.xlane.xlu0 %2196 }
 0xf5f   :  { %4509 = vpow2.f32 %v2200_v7  ;;  %v2199_v9 = vsub.f32 %v2191_v2, %v2197_v8 }
 0xf61   :  { %v2202_v10 = vmul.f32 1.442695, %v2199_v9 }
 0xf63   :  { %4511 = vpow2.f32 %v2202_v10 }
 0xf69   :  { %v4510_v11 = vpop.eup %4509 }
 0xf6a   :  { %v2204_v12 = vsel %vm537_vm3, %v4510_v11, 0.0 }
 0xf6b   :  { %2205 = vadd.xlane.f32.xlu1 %v2204_v12 }
 0xf6d   :  { %v4512_v13 = vpop.eup %4511 }
 0xf6e   :  { %v2207_v14 = vsel %vm537_vm3, %v4512_v13, 0.0 }
 0xf6f   :  { %2208 = vadd.xlane.f32.xlu0 %v2207_v14 }
 0xff8   :  { %v2206_v21 = vpop.xlane.xlu1 %2205 }
 0xff9   :  { %4513 = vrcp.f32 %v2206_v21 }
 0xffc   :  { %v2209_v22 = vpop.xlane.xlu0 %2208 }
 0xffd   :  { %4515 = vrcp.f32 %v2209_v22 }
0x1003   :  { %v4514_v25 = vpop.eup %4513 }
0x1004   :  { %v2212_v26 = vmul.f32 %v4514_v25, %v4510_v11  ;;  %v4425_v25 = vpack.c.bf16 %v3772_v24, %v3771_v23  ;;  %v3788_v23 = vld [vmem:[%s5219_s9 + $0x1] ss:$0 sm:$0xff] }
0x1006   :  { %4171 = vmatmul.mubr.msk.f32.vlgmr.msra.gmra.mrb[18].mxu0 %vm537_vm3, %v2212_v26  ;;  %v3739_v26 = vld [vmem:[%s5215_s6 + $0x20] sm:$0xff] }
0x1007   :  { %v4516_v32 = vpop.eup %4515  ;;  %4404 = vmatpush3.bf16.msra.mxu0 %v4401_v17  ;;  %4186 = vmatprep.mubr.msk.f32.mxu0 %vm54_vm0, %v4945_v38 }
0x1008   :  { %v2213_v33 = vmul.f32 %v4516_v32, %v4512_v13  ;;  %4406 = vmatprep.subr.bf16.mxu0 %v4405_v27 }
0x100a   :  { %4176 = vmatmul.mubr.msk.f32.vlgmr.msra.gmra.mrb[26].mxu1 %vm537_vm3, %v2213_v33  ;;  %v3778_v33 = vld [vmem:[%s5216_s10 + $0x6] ss:$0 sm:$0xff] }
0x100b   :  { %4408 = vmatpush3.bf16.msra.mxu0 %v4405_v27  ;;  %4412 = vmatpush3.bf16.msra.mxu1 %v4409_v20  ;;  %v3740_v27 = vld [vmem:[%s5215_s6 + $0x28] sm:$0xff] }
0x100c   :  { %4197 = vmatprep.mubr.msk.f32.mxu1 %vm54_vm0, %v4945_v38  ;;  %4414 = vmatprep.subr.bf16.mxu1 %v4413_v34  ;;  %v4429_v28 = vpack.c.bf16 %v3740_v27, %v3739_v26 }
0x100d   :  { %4418 = vmatprep.subr.bf16.mxu0 %v4417_v35 }
0x100e   :  { %4187 = vmatmul.mubr.msk.f32.vlgmr.msra.gmra.mrb[20].mxu0 %vm54_vm0, %v4947_v39 }
0x100f   :  { %4416 = vmatpush3.bf16.msra.mxu1 %v4413_v34  ;;  %4420 = vmatpush3.bf16.msra.mxu0 %v4417_v35 }
0x1010   :  { %4208 = vmatprep.mubr.msk.f32.mxu0 %vm54_vm0, %v4945_v38  ;;  %4422 = vmatprep.subr.bf16.mxu0 %v4421_v40 }
0x1011   :  { %4211 = vmatprep.subr.mxu1 %v4539_v48 }
0x1012   :  { %4198 = vmatmul.mubr.msk.f32.vlgmr.msra.gmra.mrb[28].mxu1 %vm54_vm0, %v4947_v39 }
0x1013   :  { %4424 = vmatpush3.bf16.msra.mxu0 %v4421_v40  ;;  %4213 = vmatprep.mubr.msk.f32.mxu1 %vm4540_vm1, %v4539_v48 }
0x1014   :  { %4221 = vmatprep.subr.mxu0 %v4539_v48 }
0x1016   :  { %4209 = vmatmul.mubr.msk.f32.vlgmr.msra.gmra.mrb[22].mxu0 %vm54_vm0, %v4947_v39 }
0x1017   :  { %4223 = vmatprep.mubr.msk.f32.mxu0 %vm4540_vm1, %v4539_v48 }
0x10d9   :  { %v5047_v42 = vpop.f32.mrb[18].mxu0 }
0x10da   :  { %v4172_v43 = vpop.f32.mrb[19].mxu0 }
0x10dd   :  { %v5049_v44 = vpop.f32.mrb[26].mxu1 }
0x10de   :  { %v4177_v45 = vpop.f32.mrb[27].mxu1 }
0x10e1   :  { %v4188_v47 = vpop.f32.mrb[20].mxu0 }
0x10e2   :  { %v2442_v50 = vpop.f32.mrb[21].mxu0  ;;  %v2448_v61 = vadd.f32 %v4188_v47, %v3746_v49 }
0x10e3   :  { %v2443_v57 = vadd.f32 %v3746_v49, %v2442_v50 }
0x10e5   :  { %v4199_v53 = vpop.f32.mrb[28].mxu1 }
0x10e6   :  { %v2530_v54 = vpop.f32.mrb[29].mxu1  ;;  %v2536_v59 = vadd.f32 %v4199_v53, %v3754_v52 }
0x10e7   :  { %v2531_v55 = vadd.f32 %v3754_v52, %v2530_v54 }
0x10e9   :  { %v4210_v56 = vpop.f32.mrb[22].mxu0  ;;  %4212 = vmatpush3.xpose.msk.msra.mxu1 %vm368_vm2, %v2531_v55 }
0x10ea   :  { %v2618_v58 = vpop.f32.mrb[23].mxu0  ;;  %4216 = vmatprep.subr.mxu1 %v4539_v48  ;;  %v2624_v62 = vadd.f32 %v4210_v56, %v3762_v51  ;;  %v3784_v56 = vld [vmem:[%s5217_s7 + $0x28] sm:$0xff] }
0x10eb   :  { %v2619_v60 = vadd.f32 %v3762_v51, %v2618_v58  ;;  %v3785_v58 = vld [vmem:[%s5217_s7 + $0x30] sm:$0xff] }
0x10ec   :  { %4214 = vmatmul.mubr.msk.f32.vlgmr.msra.gmra.mrb[30].mxu1 %vm368_vm2, %v2443_v57 }
0x10ed   :  { %4217 = vmatpush3.xpose.msk.msra.mxu1 %vm368_vm2, %v2536_v59  ;;  %4222 = vmatpush3.msra.mxu0 %v2619_v60  ;;  %v3786_v59 = vld [vmem:[%s5217_s7 + $0x38] sm:$0xff] }
0x10ee   :  { %4218 = vmatprep.mubr.msk.f32.mxu1 %vm4540_vm1, %v4539_v48  ;;  %4226 = vmatprep.subr.mxu1 %v4539_v48  ;;  %v4437_v60 = vpack.c.bf16 %v3786_v59, %v3785_v58 }
0x10ef   :  { %4426 = vmatprep.subr.bf16.mxu0 %v4425_v25 }
0x10f0   :  { %4219 = vmatmul.mubr.msk.f32.vlgmr.msra.gmra.mrb[32].mxu1 %vm368_vm2, %v2448_v61 }
0x10f1   :  { %4227 = vmatpush3.msra.mxu1 %v2624_v62  ;;  %4228 = vmatprep.mubr.msk.f32.mxu1 %vm4540_vm1, %v4539_v48 }
0x11bf   :  { %v2699_v46 = vpop.f32.mrb[30].mxu1 }
0x11c0   :  { %v2779_v41 = vmul.f32 0.25, %v2699_v46  ;;  %v4215_v63 = vpop.f32.mrb[31].mxu1 }
0x11c2   :  { %v2781_v0 = vadd.f32 %v4719_v1, %v2779_v41 }
0x11c3   :  { %v2775_v2 = vpop.f32.mrb[32].mxu1 }
0x11c4   :  { %v2780_v3 = vmul.f32 0.25, %v2775_v2  ;;  %v4220_v4 = vpop.f32.mrb[33].mxu1  ;;  %v2783_v5 = vsel %vm537_vm3, %v2781_v0, -inf }
0x11c5   :  { %2784 = vmax.xlane.f32.xlu0 %v2783_v5 }
0x11c6   :  { %v2782_v7 = vadd.f32 %v4725_v6, %v2780_v3  ;;  %v3781_v3 = vld [vmem:[%s5216_s10 + $0x7] ss:$0 sm:$0xff] }
0x11c8   :  { %v2786_v8 = vsel %vm537_vm3, %v2782_v7, -inf }
0x11c9   :  { %2787 = vmax.xlane.f32.xlu1 %v2786_v8  ;;  %v3782_v8 = vld [vmem:[%s5216_s10 + $0x8] ss:$0 sm:$0xff] }
0x1252   :  { %v2785_v9 = vpop.xlane.xlu0 %2784 }
0x1253   :  { %v2789_v10 = vsub.f32 %v2781_v0, %v2785_v9 }
0x1255   :  { %v2791_v11 = vmul.f32 1.442695, %v2789_v10 }
0x1256   :  { %v2788_v12 = vpop.xlane.xlu1 %2787 }
0x1257   :  { %4517 = vpow2.f32 %v2791_v11  ;;  %v2790_v13 = vsub.f32 %v2782_v7, %v2788_v12 }
0x1259   :  { %v2793_v14 = vmul.f32 1.442695, %v2790_v13  ;;  %v3791_v13 = vld [vmem:[%s5218_s8 + $0x40] sm:$0xff] }
0x125b   :  { %4519 = vpow2.f32 %v2793_v14  ;;  %v3792_v14 = vld [vmem:[%s5218_s8 + $0x48] sm:$0xff] }
0x1261   :  { %v4518_v1 = vpop.eup %4517 }
0x1262   :  { %v2795_v15 = vsel %vm537_vm3, %v4518_v1, 0.0 }
0x1263   :  { %2796 = vadd.xlane.f32.xlu0 %v2795_v15  ;;  %v3793_v15 = vld [vmem:[%s5218_s8 + $0x50] sm:$0xff] }
0x1265   :  { %v4520_v16 = vpop.eup %4519 }
0x1266   :  { %v2798_v17 = vsel %vm537_vm3, %v4520_v16, 0.0 }
0x1267   :  { %2799 = vadd.xlane.f32.xlu1 %v2798_v17 }
0x12f0   :  { %v2797_v6 = vpop.xlane.xlu0 %2796 }
0x12f1   :  { %4521 = vrcp.f32 %v2797_v6  ;;  %v3795_v6 = vld [vmem:[%s5218_s8 + $0x60] sm:$0xff] }
0x12f4   :  { %v2800_v18 = vpop.xlane.xlu1 %2799 }
0x12f5   :  { %4523 = vrcp.f32 %v2800_v18  ;;  %v3796_v18 = vld [vmem:[%s5218_s8 + $0x68] sm:$0xff] }
0x12fb   :  { %v4522_v19 = vpop.eup %4521 }
0x12fc   :  { %v2803_v20 = vmul.f32 %v4522_v19, %v4518_v1  ;;  %v4441_v1 = vpack.c.bf16 %v3792_v14, %v3791_v13  ;;  %v4449_v19 = vpack.c.bf16 %v3796_v18, %v3795_v6  ;;  %v3806_v14 = vld [vmem:[%s5216_s10 + $0xb] ss:$0 sm:$0xff] }
0x12fe   :  { %4224 = vmatmul.mubr.msk.f32.vlgmr.msra.gmra.mrb[24].mxu0 %vm537_vm3, %v2803_v20  ;;  %v3797_v20 = vld [vmem:[%s5218_s8 + $0x70] sm:$0xff] }
0x12ff   :  { %v4524_v21 = vpop.eup %4523  ;;  %4428 = vmatpush3.bf16.msra.mxu0 %v4425_v25 }
0x1300   :  { %v2804_v22 = vmul.f32 %v4524_v21, %v4520_v16  ;;  %4430 = vmatprep.subr.bf16.mxu0 %v4429_v28  ;;  %v3794_v16 = vld [vmem:[%s5218_s8 + $0x58] sm:$0xff] }
0x1301   :  { %v4445_v17 = vpack.c.bf16 %v3794_v16, %v3793_v15  ;;  %v3798_v21 = vld [vmem:[%s5218_s8 + $0x78] sm:$0xff] }
0x1302   :  { %4229 = vmatmul.mubr.msk.f32.vlgmr.msra.gmra.mrb[34].mxu1 %vm537_vm3, %v2804_v22  ;;  %v4453_v22 = vpack.c.bf16 %v3798_v21, %v3797_v20  ;;  %v3514_v20 = vld [vmem:[%s5221_s13 + $0x8] sm:$0xff]  ;;  %v3515_v21 = vld [vmem:[%s5221_s13 + $0x10] sm:$0xff] }
0x13d1   :  { %v2874_v29 = vpop.f32.mrb[24].mxu0 }
0x13d2   :  { %v4225_v30 = vpop.f32.mrb[25].mxu0  ;;  %4235 = vmatprep.mubr.msk.f32.mxu0 %vm368_vm2, %v2874_v29 }
0x13d5   :  { %v2947_v31 = vpop.f32.mrb[34].mxu1 }
0x13d6   :  { %v4230_v32 = vpop.f32.mrb[35].mxu1  ;;  %4236 = vmatmul.mubr.msk.f32.vlgmr.msra.gmra.mrb[26].mxu0 %vm368_vm2, %v2947_v31 }
0x13d7   :  { %4432 = vmatpush3.bf16.msra.mxu0 %v4429_v28  ;;  %4242 = vmatprep.mubr.msk.f32.mxu0 %vm368_vm2, %v5047_v42 }
0x13d8   :  { %4442 = vmatprep.subr.bf16.mxu0 %v4441_v1 }
0x13de   :  { %4243 = vmatmul.mubr.msk.f32.vlgmr.msra.gmra.mrb[26].mxu0 %vm368_vm2, %v5049_v44 }
0x13df   :  { %4444 = vmatpush3.bf16.msra.mxu0 %v4441_v1 }
0x13e0   :  { %4446 = vmatprep.subr.bf16.mxu0 %v4445_v17 }
0x13e3   :  { %4448 = vmatpush3.bf16.msra.mxu0 %v4445_v17 }
0x13e4   :  { %4450 = vmatprep.subr.bf16.mxu0 %v4449_v19 }
0x13e7   :  { %4452 = vmatpush3.bf16.msra.mxu0 %v4449_v19  ;;  %v3513_v19 = vld [vmem:[%s5221_s13] sm:$0xff] }
0x13e8   :  { %4454 = vmatprep.subr.bf16.mxu0 %v4453_v22 }
0x13eb   :  { %4456 = vmatpush3.bf16.msra.mxu0 %v4453_v22  ;;  %v4464_v22 = vpack.c.bf16 %v3514_v20, %v3513_v19 }
0x14b1   :  { %v4244_v34 = vpop.f32.mrb[26].mxu0 }
0x14b2   :  { %v3125_v35 = vadd.f32 %v4244_v34, %v3778_v33  ;;  %v3107_v36 = vpop.f32.mrb[27].mxu0 }
0x14b3   :  { %v3124_v37 = vadd.f32 %v3778_v33, %v3107_v36 }
0x14b4   :  { %v3127_v40 = vadd.f32 %v3125_v35, %v4947_v39 }
0x14b5   :  { %v3126_v43 = vadd.f32 %v3124_v37, %v4945_v38  ;;  %v3783_v38 = vld [vmem:[%s5217_s7 + $0x20] sm:$0xff] }
0x14b6   :  { %v3135_v45 = vsel %vm54_vm0, %v3127_v40, 0.0  ;;  %v4433_v57 = vpack.c.bf16 %v3784_v56, %v3783_v38 }
0x14b7   :  { %3136 = vadd.xlane.f32.xlu1 %v3135_v45  ;;  %v3132_v42 = vsel %vm54_vm0, %v3126_v43, 0.0 }
0x14b8   :  { %3133 = vadd.xlane.f32.xlu0 %v3132_v42  ;;  %4434 = vmatprep.subr.bf16.mxu1 %v4433_v57 }
0x14b9   :  { %4436 = vmatpush3.bf16.msra.mxu1 %v4433_v57 }
0x14ba   :  { %4438 = vmatprep.subr.bf16.mxu1 %v4437_v60 }
0x14bd   :  { %4440 = vmatpush3.bf16.msra.mxu1 %v4437_v60  ;;  %v3424_v60 = vld [vmem:[%s5220_s11] sm:$0xff] }
0x1544   :  { %v3137_v47 = vpop.xlane.xlu1 %3136 }
0x1545   :  { %v3139_v44 = vmul.f32 0.03125, %v3137_v47  ;;  %v3134_v50 = vpop.xlane.xlu0 %3133 }
0x1546   :  { %v3138_v52 = vmul.f32 0.03125, %v3134_v50 }
0x1547   :  { %v3141_v53 = vsub.f32 %v3127_v40, %v3139_v44  ;;  %v3800_v40 = vld [vmem:[%s5216_s10 + $0x9] ss:$0 sm:$0xff] }
0x1548   :  { %v3140_v54 = vsub.f32 %v3126_v43, %v3138_v52 }
0x1549   :  { %v3143_v49 = vmul.f32 %v3141_v53, %v3141_v53 }
0x154a   :  { %v3142_v55 = vmul.f32 %v3140_v54, %v3140_v54 }
0x154b   :  { %v3147_v51 = vsel %vm54_vm0, %v3143_v49, 0.0 }
0x154c   :  { %3148 = vadd.xlane.f32.xlu1 %v3147_v51  ;;  %v3144_v39 = vsel %vm54_vm0, %v3142_v55, 0.0 }
0x154d   :  { %3145 = vadd.xlane.f32.xlu0 %v3144_v39 }
0x15d9   :  { %v3149_v61 = vpop.xlane.xlu1 %3148 }
0x15da   :  { %v3151_v62 = vmul.f32 0.03125, %v3149_v61  ;;  %v3146_v46 = vpop.xlane.xlu0 %3145  ;;  %v3425_v61 = vld [vmem:[%s5220_s11 + $0x8] sm:$0xff] }
0x15db   :  { %v3150_v41 = vmul.f32 0.03125, %v3146_v46  ;;  %v3426_v46 = vld [vmem:[%s5220_s11 + $0x10] sm:$0xff] }
0x15dc   :  { %v3153_v63 = vadd.f32 1e-05, %v3151_v62  ;;  %v4458_v62 = vpack.c.bf16 %v3425_v61, %v3424_v60 }
0x15dd   :  { %v3152_v0 = vadd.f32 1e-05, %v3150_v41  ;;  %v3427_v41 = vld [vmem:[%s5220_s11 + $0x18] sm:$0xff] }
0x15de   :  { %4525 = vrsqrt.f32 %v3153_v63  ;;  %v4541_v63 = vmov 0.0|0.0  }
0x15df   :  { %4527 = vrsqrt.f32 %v3152_v0  ;;  %4457 = vmatprep.subr.bf16.mxu1 %v4541_v63  ;;  %v4461_v0 = vpack.c.bf16 %v3427_v41, %v3426_v46 }
0x15e8   :  { %v4526_v2 = vpop.eup %4525 }
0x15e9   :  { %v4528_v4 = vpop.eup %4527  ;;  %v3157_v5 = vmul.f32 %v4526_v2, %v3141_v53 }
0x15ea   :  { %v3156_v7 = vmul.f32 %v4528_v4, %v3140_v54 }
0x15eb   :  { %v3165_v9 = vmul.f32 %v3781_v3, %v3157_v5 }
0x15ec   :  { %v3164_v10 = vmul.f32 %v3781_v3, %v3156_v7 }
0x15ed   :  { %v3173_v12 = vadd.f32 %v3782_v8, %v3165_v9 }
0x15ee   :  { %v3172_v11 = vadd.f32 %v3782_v8, %v3164_v10  ;;  %v3805_v10 = vld [vmem:[%s5216_s10 + $0xa] ss:$0 sm:$0xff] }
0x15f0   :  { %4253 = vmatprep.mubr.msk.f32.mxu1 %vm54_vm0, %v3172_v11 }
0x15f1   :  { %4254 = vmatmul.mubr.msk.f32.vlgmr.msra.gmra.mrb[36].mxu1 %vm54_vm0, %v3173_v12 }
0x15f2   :  { %4283 = vmatprep.mubr.msk.f32.mxu1 %vm4540_vm1, %v4539_v48  ;;  %4459 = vmatpush3.bf16.msra.mxu1 %v4458_v62 }
0x15f3   :  { %4460 = vmatprep.subr.bf16.mxu1 %v4541_v63 }
0x15f6   :  { %4462 = vmatpush3.bf16.msra.mxu1 %v4461_v0 }
0x15f7   :  { %4463 = vmatprep.subr.bf16.mxu1 %v4541_v63 }
0x16c4   :  { %v4255_v24 = vpop.f32.mrb[36].mxu1 }
0x16c5   :  { %v3265_v25 = vadd.f32 %v4255_v24, %v3788_v23  ;;  %v3259_v26 = vpop.f32.mrb[37].mxu1 }
0x16c6   :  { %v3260_v27 = vadd.f32 %v3788_v23, %v3259_v26  ;;  %v3516_v23 = vld [vmem:[%s5221_s13 + $0x18] sm:$0xff] }
0x16c7   :  { %v3271_v28 = vmul.f32 0.70710677, %v3265_v25  ;;  %v3269_v35 = vmul.f32 0.5, %v3265_v25  ;;  %v4467_v24 = vpack.c.bf16 %v3516_v23, %v3515_v21 }
0x16c8   :  { %v3270_v29 = vmul.f32 0.70710677, %v3260_v27  ;;  %v3268_v33 = vmul.f32 0.5, %v3260_v27 }
0x16c9   :  { %4529 = verf.f32 %v3271_v28 }
0x16ca   :  { %4531 = verf.f32 %v3270_v29  ;;  %v4542_v29 = vmov 1966171168  }
0x16d3   :  { %v4530_v30 = vpop.eup %4529 }
0x16d4   :  { %v4532_v31 = vpop.eup %4531  ;;  %v3275_v32 = vadd.f32 1.0, %v4530_v30  ;;  %v3599_v30 = vunpack.c.l.s4 %v4542_v29 }
0x16d5   :  { %v3274_v34 = vadd.f32 1.0, %v4532_v31  ;;  %v3601_v31 = vlaneseq }
0x16d6   :  { %v3277_v37 = vmul.f32 %v3275_v32, %v3269_v35  ;;  %v3600_v32 = vunpack.c.0.s8 %v3599_v30 }
0x16d7   :  { %v3276_v36 = vmul.f32 %v3274_v34, %v3268_v33  ;;  %v3602_v33 = vshrl.u32 %v3601_v31, 7  ;;  %v3809_v34 = vld [vmem:[%s5223_s14] ss:$0 sm:$0xff] }
0x16d9   :  { %4272 = vmatprep.mubr.msk.f32.mxu0 %vm1636_vm4, %v3276_v36  ;;  %v3603_v35 = vsub.s32 %v3600_v32, %v3602_v33 }
0x16da   :  { %4273 = vmatmul.mubr.msk.f32.vlgmr.msra.gmra.mrb[28].mxu0 %vm1636_vm4, %v3277_v37 }
0x17ad   :  { %v4274_v43 = vpop.f32.mrb[28].mxu0 }
0x17ae   :  { %v3373_v45 = vadd.f32 %v4274_v43, %v3800_v40  ;;  %v3367_v42 = vpop.f32.mrb[29].mxu0 }
0x17af   :  { %v3368_v47 = vadd.f32 %v3800_v40, %v3367_v42 }
0x17b0   :  { %v3377_v44 = vadd.f32 %v3373_v45, %v3173_v12 }
0x17b1   :  { %v3376_v50 = vadd.f32 %v3368_v47, %v3172_v11 }
0x17b2   :  { %v3385_v52 = vsel %vm54_vm0, %v3377_v44, 0.0 }
0x17b3   :  { %3386 = vadd.xlane.f32.xlu0 %v3385_v52  ;;  %v3382_v53 = vsel %vm54_vm0, %v3376_v50, 0.0 }
0x17b4   :  { %3383 = vadd.xlane.f32.xlu1 %v3382_v53 }
0x1840   :  { %v3387_v54 = vpop.xlane.xlu0 %3386 }
0x1841   :  { %v3389_v49 = vmul.f32 0.03125, %v3387_v54  ;;  %v3384_v55 = vpop.xlane.xlu1 %3383 }
0x1842   :  { %v3388_v51 = vmul.f32 0.03125, %v3384_v55 }
0x1843   :  { %v3391_v39 = vsub.f32 %v3377_v44, %v3389_v49 }
0x1844   :  { %v3390_v38 = vsub.f32 %v3376_v50, %v3388_v51 }
0x1845   :  { %v3393_v56 = vmul.f32 %v3391_v39, %v3391_v39 }
0x1846   :  { %v3392_v57 = vmul.f32 %v3390_v38, %v3390_v38 }
0x1847   :  { %v3397_v58 = vsel %vm54_vm0, %v3393_v56, 0.0 }
0x1848   :  { %3398 = vadd.xlane.f32.xlu0 %v3397_v58  ;;  %v3394_v59 = vsel %vm54_vm0, %v3392_v57, 0.0 }
0x1849   :  { %3395 = vadd.xlane.f32.xlu1 %v3394_v59 }
0x18d5   :  { %v3399_v2 = vpop.xlane.xlu0 %3398 }
0x18d6   :  { %v3401_v3 = vmul.f32 0.03125, %v3399_v2  ;;  %v3396_v4 = vpop.xlane.xlu1 %3395 }
0x18d7   :  { %v3400_v5 = vmul.f32 0.03125, %v3396_v4 }
0x18d8   :  { %v3403_v7 = vadd.f32 1e-05, %v3401_v3 }
0x18d9   :  { %v3402_v8 = vadd.f32 1e-05, %v3400_v5 }
0x18da   :  { %4533 = vrsqrt.f32 %v3403_v7 }
0x18db   :  { %4535 = vrsqrt.f32 %v3402_v8 }
0x18e4   :  { %v4534_v9 = vpop.eup %4533 }
0x18e5   :  { %v4536_v11 = vpop.eup %4535  ;;  %v3407_v12 = vmul.f32 %v4534_v9, %v3391_v39 }
0x18e6   :  { %v3406_v13 = vmul.f32 %v4536_v11, %v3390_v38 }
0x18e7   :  { %v3415_v1 = vmul.f32 %v3805_v10, %v3407_v12 }
0x18e8   :  { %v3414_v15 = vmul.f32 %v3805_v10, %v3406_v13 }
0x18e9   :  { %v3423_v16 = vadd.f32 %v3806_v14, %v3415_v1 }
0x18ea   :  { %v3422_v17 = vadd.f32 %v3806_v14, %v3414_v15 }
0x18eb   :  { %v3437_v6 = vrot.slane %v3423_v16, 7 }
0x18ed   :  { %v3439_v18 = vsel %vm3438_vm5, %v3437_v6, %v3422_v17 }
0x18ee   :  { %4284 = vmatmul.mubr.msk.f32.vlgmr.msra.gmra.mrb[38].mxu1 %vm54_vm0, %v3439_v18 }
0x18ef   :  { %4294 = vmatprep.mubr.msk.f32.mxu1 %vm4540_vm1, %v4539_v48  ;;  %4465 = vmatpush3.bf16.msra.mxu1 %v4464_v22  ;;  %v3807_v48 = vld [vmem:[%s5222_s12] ss:$0 sm:$0xff] }
0x18f0   :  { %4466 = vmatprep.subr.bf16.mxu1 %v4541_v63 }
0x18f3   :  { %4468 = vmatpush3.bf16.msra.mxu1 %v4467_v24 }
0x19c1   :  { %v3508_v25 = vpop.f32.mrb[38].mxu1 }
0x19c2   :  { %v3509_v26 = vadd.f32 %v3807_v48, %v3508_v25  ;;  %v4285_v27 = vpop.f32.mrb[39].mxu1 }
0x19c4   :  { %4537 = vtanh.f32 %v3509_v26 }
0x19ce   :  { %v4538_v28 = vpop.eup %4537 }
0x19cf   :  { %4295 = vmatmul.mubr.msk.f32.vlgmr.msra.gmra.mrb[40].mxu1 %vm54_vm0, %v4538_v28 }
0x1aa2   :  { %v3593_v36 = vpop.f32.mrb[40].mxu1 }
0x1aa3   :  { %v3594_v37 = vadd.f32 %v3809_v34, %v3593_v36  ;;  %v4296_v40 = vpop.f32.mrb[41].mxu1 }
0x1aa5   :  { %v3604_v43 = vrot.slane %v3594_v37, %v3603_v35 }
0x1aa7   :  { %v3605_v45 = vcombine.high %v3604_v43, %v3604_v43  ;;  %3811 = vst.sshfl [vmem:[%s5224_s15] sm:$0x1 pattern:$0x73625140] %v3604_v43 }
0x1aa9   :  { %3812 = vst.sshfl [vmem:[%s5224_s15 + $0x1] sm:$0x1 pattern:$0x73625140] %v3605_v45 }

</bundles_post_ra>
